<compile_context>
chip_gen: v7x
topology: tpu7x:2x2x1
jax: 0.10.0
libtpu: 0.0.40
codegen_flags: <defaults>
</compile_context>

<pallas_src>
import functools

import numpy as np
import jax
import jax.numpy as jnp
from jax.experimental import pallas as pl
from jax.experimental.pallas import tpu as pltpu


def _spiking_residual_kernel(H, W, C, K,
                             x_ref, pv1_ref, pz1_ref, pv2_ref, pz2_ref,
                             w1_ref, w2_ref, mask_ref,
                             leak1_ref, thr1_ref, leak2_ref, thr2_ref,
                             out_ref, nv1_ref, nz1_ref, nv2_ref, nz2_ref):
    """Fused per-batch-element block in channels-first (C, H*W) layout."""
    HW = H * W
    pad = K // 2

    def conv(src, w_kkcc_ref):
        # 'same' conv: per tap, a lane-axis roll (XLU, no relayout copy) +
        # boundary mask + one small bf16 MXU channel-mix matmul, f32 accumulate.
        acc = jnp.zeros((C, HW), jnp.float32)
        for kh in range(K):
            for kw in range(K):
                t = kh * K + kw
                s = (kh - pad) * W + (kw - pad)          # flat source offset
                # shifted[f] == src[f + s]   (np.roll convention -> roll by -s)
                shifted = src if s == 0 else pltpu.roll(src, (-s) % HW, axis=1)
                if s != 0:
                    shifted = shifted * mask_ref[t]      # zero out-of-image taps
                acc = acc + jnp.dot(w_kkcc_ref[t], shifted.astype(jnp.bfloat16),
                                    preferred_element_type=jnp.float32)
        return acc

    x = x_ref[0]                                   # (C, HW) f32
    pv1, pz1 = pv1_ref[0], pz1_ref[0]
    pv2, pz2 = pv2_ref[0], pz2_ref[0]

    leak1, thr1 = leak1_ref[...], thr1_ref[...]    # (C, 1); sigmoid/clamp hoisted
    leak2, thr2 = leak2_ref[...], thr2_ref[...]

    # ---- conv1 + LIF1 (hard reset; arctanspike forward = Heaviside) ----
    v1 = conv(x, w1_ref)
    new_v1 = pv1 * leak1 * (1.0 - pz1) + v1
    new_z1 = (new_v1 > thr1).astype(jnp.float32)

    # ---- conv2 + LIF2 ----
    v2 = conv(new_z1, w2_ref)
    new_v2 = pv2 * leak2 * (1.0 - pz2) + v2
    new_z2 = (new_v2 > thr2).astype(jnp.float32)

    # ---- residual + outputs (all lane-dense: last dim = H*W) ----
    out_ref[0] = new_z2 + x
    nv1_ref[0] = new_v1
    nz1_ref[0] = new_z1.astype(nz1_ref.dtype)      # spikes 0/1 -> exact in bf16
    nv2_ref[0] = new_v2
    nz2_ref[0] = new_z2.astype(nz2_ref.dtype)


def spiking_residual_block(x, prev_v1, prev_z1, prev_v2, prev_z2,
                           w1, w2, leak1, thr1, leak2, thr2, kernel_size=3):
    """x / prev_* : (B, C, H, W) float (torch NCHW convention)
       w1, w2     : (C, C, K, K)  (torch OIHW), bias-free
       leak*, thr*: (C, 1, 1) raw LIF parameters (pre-sigmoid / pre-clamp)
    Returns (out, new_v1, new_z1, new_v2, new_z2); spike outputs are bf16 (exact 0/1)."""
    B, C, H, W = x.shape
    K = kernel_size
    pad = K // 2
    HW = H * W
    f32 = jnp.float32

    # NCHW -> (B, C, H*W): contiguous reshape, no transpose / pad HBM round-trip.
    flat = lambda a: a.astype(f32).reshape(B, C, HW)
    x_f = flat(x)
    pv1, pz1, pv2, pz2 = flat(prev_v1), flat(prev_z1), flat(prev_v2), flat(prev_z2)

    # (Cout, Cin, K, K) -> (K*K, Cout, Cin), bf16 for the MXU.
    wprep = lambda w: (jnp.transpose(w.astype(f32), (2, 3, 0, 1))
                       .reshape(K * K, C, C).astype(jnp.bfloat16))
    w1_k, w2_k = wprep(w1), wprep(w2)

    # Per-tap 'same'-padding validity masks over flattened output positions.
    hh = np.arange(H)[:, None]
    ww = np.arange(W)[None, :]
    masks = []
    for kh in range(K):
        for kw in range(K):
            dh, dw = kh - pad, kw - pad
            valid = (hh + dh >= 0) & (hh + dh < H) & (ww + dw >= 0) & (ww + dw < W)
            masks.append(valid.reshape(1, HW))
    mask_arr = jnp.asarray(np.stack(masks), dtype=f32)          # (K*K, 1, HW)

    # Grid-invariant LIF params: hoist sigmoid / clamp out of the kernel.
    col = lambda p: p.astype(f32).reshape(C, 1)
    leak1_s, leak2_s = jax.nn.sigmoid(col(leak1)), jax.nn.sigmoid(col(leak2))
    thr1_c, thr2_c = jnp.maximum(col(thr1), 0.01), jnp.maximum(col(thr2), 0.01)

    def per_batch():
        return pl.BlockSpec((1, C, HW), lambda b: (b, 0, 0))

    def bcast(shape):
        n = len(shape)
        return pl.BlockSpec(shape, lambda b: (0,) * n)

    in_specs = (
        [per_batch() for _ in range(5)]                      # x, pv1, pz1, pv2, pz2
        + [bcast((K * K, C, C)), bcast((K * K, C, C)),       # w1, w2 (bf16)
           bcast((K * K, 1, HW)),                            # boundary masks
           bcast((C, 1)), bcast((C, 1)),                     # sigmoid(leak1), clamp(thr1)
           bcast((C, 1)), bcast((C, 1))]                     # sigmoid(leak2), clamp(thr2)
    )
    out_specs = [per_batch() for _ in range(5)]
    out_shape = [
        jax.ShapeDtypeStruct((B, C, HW), f32),               # out = new_z2 + inp
        jax.ShapeDtypeStruct((B, C, HW), f32),               # new_v1
        jax.ShapeDtypeStruct((B, C, HW), jnp.bfloat16),      # new_z1 (0/1 exact)
        jax.ShapeDtypeStruct((B, C, HW), f32),               # new_v2
        jax.ShapeDtypeStruct((B, C, HW), jnp.bfloat16),      # new_z2 (0/1 exact)
    ]

    kernel = functools.partial(_spiking_residual_kernel, H, W, C, K)

    # VMEM per grid step: ~10 x (C*HW) f32 tiles double-buffered (~160 KiB here)
    # -> far below the default scoped limit on v5e/v6e/v7x.
    # TODO(synk): for large H*W*C, add a second grid axis tiling H*W (with a
    # +-(W+1) halo folded into the masks) and budget vmem_limit_bytes explicitly.
    outs = pl.pallas_call(
        kernel,
        out_shape=out_shape,
        grid_spec=pltpu.PrefetchScalarGridSpec(
            num_scalar_prefetch=0,
            grid=(B,),
            in_specs=in_specs,
            out_specs=out_specs,
        ),
        compiler_params=pltpu.CompilerParams(
            dimension_semantics=("parallel",)),   # batch independent -> megacore
    )(x_f, pv1, pz1, pv2, pz2, w1_k, w2_k, mask_arr,
      leak1_s, thr1_c, leak2_s, thr2_c)

    out, nv1, nz1, nv2, nz2 = outs
    unflat = lambda a: a.reshape(B, C, H, W)
    return unflat(out), unflat(nv1), unflat(nz1), unflat(nv2), unflat(nz2)


if __name__ == "__main__":
    B, C, H, W = 2, 4, 16, 16
    K = 3  # stride=1, padding=1 -> 'same' (residual add requires matching shapes)

    key = jax.random.PRNGKey(0)
    ks = jax.random.split(key, 10)

    x = jax.random.normal(ks[0], (B, C, H, W), jnp.float32)
    prev_v1 = jax.random.normal(ks[1], (B, C, H, W), jnp.float32)
    prev_z1 = (jax.random.uniform(ks[2], (B, C, H, W)) > 0.5).astype(jnp.float32)
    prev_v2 = jax.random.normal(ks[3], (B, C, H, W), jnp.float32)
    prev_z2 = (jax.random.uniform(ks[4], (B, C, H, W)) > 0.5).astype(jnp.float32)

    # conv weights: uniform(-sqrt(1/C), sqrt(1/C)), no bias (norm='none' -> bias=False)
    w_scale = (1.0 / C) ** 0.5
    w1 = jax.random.uniform(ks[5], (C, C, K, K), jnp.float32, -w_scale, w_scale)
    w2 = jax.random.uniform(ks[6], (C, C, K, K), jnp.float32, -w_scale, w_scale)

    # LIF params (defaults: leak_proxy = 0, thresh ~ N(0,1))
    leak1 = jnp.zeros((C, 1, 1), jnp.float32)
    leak2 = jnp.zeros((C, 1, 1), jnp.float32)
    thr1 = jax.random.normal(ks[7], (C, 1, 1), jnp.float32)
    thr2 = jax.random.normal(ks[8], (C, 1, 1), jnp.float32)

    out, nv1, nz1, nv2, nz2 = jax.block_until_ready(
        spiking_residual_block(x, prev_v1, prev_z1, prev_v2, prev_z2,
                               w1, w2, leak1, thr1, leak2, thr2, kernel_size=K))

    # ---- verification against a pure-JAX reference (conv inputs cast to bf16
    #      like the kernel's MXU feed, f32 accumulation) ----
    bf = jnp.bfloat16

    def conv_ref(a, w):
        return jax.lax.conv_general_dilated(
            a.astype(bf), w.astype(bf), (1, 1), "SAME",
            dimension_numbers=("NCHW", "OIHW", "NCHW"),
            preferred_element_type=jnp.float32)

    l1, t1 = jax.nn.sigmoid(leak1)[None], jnp.maximum(thr1, 0.01)[None]
    l2, t2 = jax.nn.sigmoid(leak2)[None], jnp.maximum(thr2, 0.01)[None]

    nv1_ref = prev_v1 * l1 * (1.0 - prev_z1) + conv_ref(x, w1)
    assert jnp.allclose(nv1, nv1_ref, atol=1e-3, rtol=1e-3), "nv1 mismatch"

    nz1_f = nz1.astype(jnp.float32)
    nz1_ref = (nv1_ref > t1).astype(jnp.float32)
    # spike flips are only tolerated at numerically knife-edge positions
    assert not bool(jnp.any((nz1_f != nz1_ref)
                            & (jnp.abs(nv1_ref - t1) > 1e-3))), "nz1 mismatch"

    # conv2 path checked with the kernel's own spikes as input (no cascade noise)
    nv2_ref = prev_v2 * l2 * (1.0 - prev_z2) + conv_ref(nz1_f, w2)
    assert jnp.allclose(nv2, nv2_ref, atol=1e-3, rtol=1e-3), "nv2 mismatch"

    nz2_f = nz2.astype(jnp.float32)
    nz2_ref = (nv2_ref > t2).astype(jnp.float32)
    assert not bool(jnp.any((nz2_f != nz2_ref)
                            & (jnp.abs(nv2_ref - t2) > 1e-3))), "nz2 mismatch"

    assert jnp.allclose(out, nz2_f + x, atol=1e-5), "residual mismatch"
    assert out.shape == (B, C, H, W) and bool(jnp.all(jnp.isfinite(out)))

    print("KERNEL_OK")
</pallas_src>

<mosaic_0001>
module attributes {stable_mosaic.version = 11 : i64} {
  func.func @_spiking_residual_kernel(%arg0: i32, %arg1: memref<1x4x256xf32, #tpu.memory_space<vmem>>, %arg2: memref<1x4x256xf32, #tpu.memory_space<vmem>>, %arg3: memref<1x4x256xf32, #tpu.memory_space<vmem>>, %arg4: memref<1x4x256xf32, #tpu.memory_space<vmem>>, %arg5: memref<1x4x256xf32, #tpu.memory_space<vmem>>, %arg6: memref<9x4x4xbf16, #tpu.memory_space<vmem>>, %arg7: memref<9x4x4xbf16, #tpu.memory_space<vmem>>, %arg8: memref<9x1x256xf32, #tpu.memory_space<vmem>>, %arg9: memref<4x1xf32, #tpu.memory_space<vmem>>, %arg10: memref<4x1xf32, #tpu.memory_space<vmem>>, %arg11: memref<4x1xf32, #tpu.memory_space<vmem>>, %arg12: memref<4x1xf32, #tpu.memory_space<vmem>>, %arg13: memref<1x4x256xf32, #tpu.memory_space<vmem>>, %arg14: memref<1x4x256xf32, #tpu.memory_space<vmem>>, %arg15: memref<1x4x256xbf16, #tpu.memory_space<vmem>>, %arg16: memref<1x4x256xf32, #tpu.memory_space<vmem>>, %arg17: memref<1x4x256xbf16, #tpu.memory_space<vmem>>) attributes {dimension_semantics = [#tpu.dimension_semantics<parallel>], iteration_bounds = array<i64: 2>, scalar_prefetch = 0 : i64, scratch_operands = 0 : i64, tpu.core_type = #tpu.core_type<tc>, window_params = [{transform_indices = @transform_0, window_bounds = array<i64: 1, 4, 256>}, {transform_indices = @transform_1, window_bounds = array<i64: 1, 4, 256>}, {transform_indices = @transform_2, window_bounds = array<i64: 1, 4, 256>}, {transform_indices = @transform_3, window_bounds = array<i64: 1, 4, 256>}, {transform_indices = @transform_4, window_bounds = array<i64: 1, 4, 256>}, {pipeline_mode = #tpu.pipeline_mode<synchronous>, transform_indices = @transform_5, window_bounds = array<i64: 9, 4, 4>}, {pipeline_mode = #tpu.pipeline_mode<synchronous>, transform_indices = @transform_6, window_bounds = array<i64: 9, 4, 4>}, {pipeline_mode = #tpu.pipeline_mode<synchronous>, transform_indices = @transform_7, window_bounds = array<i64: 9, 1, 256>}, {pipeline_mode = #tpu.pipeline_mode<synchronous>, transform_indices = @transform_8, window_bounds = array<i64: 4, 1>}, {pipeline_mode = #tpu.pipeline_mode<synchronous>, transform_indices = @transform_9, window_bounds = array<i64: 4, 1>}, {pipeline_mode = #tpu.pipeline_mode<synchronous>, transform_indices = @transform_10, window_bounds = array<i64: 4, 1>}, {pipeline_mode = #tpu.pipeline_mode<synchronous>, transform_indices = @transform_11, window_bounds = array<i64: 4, 1>}, {transform_indices = @transform_12, window_bounds = array<i64: 1, 4, 256>}, {transform_indices = @transform_13, window_bounds = array<i64: 1, 4, 256>}, {transform_indices = @transform_14, window_bounds = array<i64: 1, 4, 256>}, {transform_indices = @transform_15, window_bounds = array<i64: 1, 4, 256>}, {transform_indices = @transform_16, window_bounds = array<i64: 1, 4, 256>}]} {
    %c0 = arith.constant 0 : index
    %c0_0 = arith.constant 0 : index
    %c0_1 = arith.constant 0 : index
    %0 = vector.load %arg1[%c0, %c0_0, %c0_1] : memref<1x4x256xf32, #tpu.memory_space<vmem>>, vector<1x4x256xf32>
    %1 = vector.shape_cast %0 : vector<1x4x256xf32> to vector<4x256xf32>
    %c0_2 = arith.constant 0 : index
    %c0_3 = arith.constant 0 : index
    %c0_4 = arith.constant 0 : index
    %2 = vector.load %arg2[%c0_2, %c0_3, %c0_4] : memref<1x4x256xf32, #tpu.memory_space<vmem>>, vector<1x4x256xf32>
    %3 = vector.shape_cast %2 : vector<1x4x256xf32> to vector<4x256xf32>
    %c0_5 = arith.constant 0 : index
    %c0_6 = arith.constant 0 : index
    %c0_7 = arith.constant 0 : index
    %4 = vector.load %arg3[%c0_5, %c0_6, %c0_7] : memref<1x4x256xf32, #tpu.memory_space<vmem>>, vector<1x4x256xf32>
    %5 = vector.shape_cast %4 : vector<1x4x256xf32> to vector<4x256xf32>
    %c0_8 = arith.constant 0 : index
    %c0_9 = arith.constant 0 : index
    %c0_10 = arith.constant 0 : index
    %6 = vector.load %arg4[%c0_8, %c0_9, %c0_10] : memref<1x4x256xf32, #tpu.memory_space<vmem>>, vector<1x4x256xf32>
    %7 = vector.shape_cast %6 : vector<1x4x256xf32> to vector<4x256xf32>
    %c0_11 = arith.constant 0 : index
    %c0_12 = arith.constant 0 : index
    %c0_13 = arith.constant 0 : index
    %8 = vector.load %arg5[%c0_11, %c0_12, %c0_13] : memref<1x4x256xf32, #tpu.memory_space<vmem>>, vector<1x4x256xf32>
    %9 = vector.shape_cast %8 : vector<1x4x256xf32> to vector<4x256xf32>
    %c0_14 = arith.constant 0 : index
    %c0_15 = arith.constant 0 : index
    %10 = vector.load %arg9[%c0_14, %c0_15] : memref<4x1xf32, #tpu.memory_space<vmem>>, vector<4x1xf32>
    %c0_16 = arith.constant 0 : index
    %c0_17 = arith.constant 0 : index
    %11 = vector.load %arg10[%c0_16, %c0_17] : memref<4x1xf32, #tpu.memory_space<vmem>>, vector<4x1xf32>
    %c0_18 = arith.constant 0 : index
    %c0_19 = arith.constant 0 : index
    %12 = vector.load %arg11[%c0_18, %c0_19] : memref<4x1xf32, #tpu.memory_space<vmem>>, vector<4x1xf32>
    %c0_20 = arith.constant 0 : index
    %c0_21 = arith.constant 0 : index
    %13 = vector.load %arg12[%c0_20, %c0_21] : memref<4x1xf32, #tpu.memory_space<vmem>>, vector<4x1xf32>
    %cst = arith.constant 0.000000e+00 : f32
    %14 = vector.broadcast %cst : f32 to vector<4x256xf32>
    %c17_i32 = arith.constant 17 : i32
    %15 = tpu.dynamic_rotate %1 by %c17_i32 dim 1 : vector<4x256xf32>, i32 -> vector<4x256xf32>
    %c0_22 = arith.constant 0 : index
    %c0_23 = arith.constant 0 : index
    %c0_24 = arith.constant 0 : index
    %16 = vector.load %arg8[%c0_22, %c0_23, %c0_24] : memref<9x1x256xf32, #tpu.memory_space<vmem>>, vector<1x1x256xf32>
    %17 = vector.shape_cast %16 : vector<1x1x256xf32> to vector<1x256xf32>
    %18 = vector.broadcast %17 : vector<1x256xf32> to vector<4x256xf32>
    %19 = arith.mulf %15, %18 : vector<4x256xf32>
    %c0_25 = arith.constant 0 : index
    %c0_26 = arith.constant 0 : index
    %c0_27 = arith.constant 0 : index
    %20 = vector.load %arg6[%c0_25, %c0_26, %c0_27] : memref<9x4x4xbf16, #tpu.memory_space<vmem>>, vector<1x4x4xbf16>
    %21 = vector.shape_cast %20 : vector<1x4x4xbf16> to vector<4x4xbf16>
    %22 = arith.truncf %19 : vector<4x256xf32> to vector<4x256xbf16>
    %cst_28 = arith.constant dense<0.000000e+00> : vector<4x256xf32>
    %23 = tpu.matmul %21, %22, %cst_28 {dimension_numbers = #tpu.dot_dimension_numbers<[1], [0], [0], [1], [0, 0, 1, 1], [], []>} : vector<4x4xbf16>, vector<4x256xbf16>, vector<4x256xf32> -> vector<4x256xf32>
    %24 = arith.addf %14, %23 : vector<4x256xf32>
    %c16_i32 = arith.constant 16 : i32
    %25 = tpu.dynamic_rotate %1 by %c16_i32 dim 1 : vector<4x256xf32>, i32 -> vector<4x256xf32>
    %c1 = arith.constant 1 : index
    %c0_29 = arith.constant 0 : index
    %c0_30 = arith.constant 0 : index
    %26 = vector.load %arg8[%c1, %c0_29, %c0_30] : memref<9x1x256xf32, #tpu.memory_space<vmem>>, vector<1x1x256xf32>
    %27 = vector.shape_cast %26 : vector<1x1x256xf32> to vector<1x256xf32>
    %28 = vector.broadcast %27 : vector<1x256xf32> to vector<4x256xf32>
    %29 = arith.mulf %25, %28 : vector<4x256xf32>
    %c1_31 = arith.constant 1 : index
    %c0_32 = arith.constant 0 : index
    %c0_33 = arith.constant 0 : index
    %30 = vector.load %arg6[%c1_31, %c0_32, %c0_33] : memref<9x4x4xbf16, #tpu.memory_space<vmem>>, vector<1x4x4xbf16>
    %31 = vector.shape_cast %30 : vector<1x4x4xbf16> to vector<4x4xbf16>
    %32 = arith.truncf %29 : vector<4x256xf32> to vector<4x256xbf16>
    %cst_34 = arith.constant dense<0.000000e+00> : vector<4x256xf32>
    %33 = tpu.matmul %31, %32, %cst_34 {dimension_numbers = #tpu.dot_dimension_numbers<[1], [0], [0], [1], [0, 0, 1, 1], [], []>} : vector<4x4xbf16>, vector<4x256xbf16>, vector<4x256xf32> -> vector<4x256xf32>
    %34 = arith.addf %24, %33 : vector<4x256xf32>
    %c15_i32 = arith.constant 15 : i32
    %35 = tpu.dynamic_rotate %1 by %c15_i32 dim 1 : vector<4x256xf32>, i32 -> vector<4x256xf32>
    %c2 = arith.constant 2 : index
    %c0_35 = arith.constant 0 : index
    %c0_36 = arith.constant 0 : index
    %36 = vector.load %arg8[%c2, %c0_35, %c0_36] : memref<9x1x256xf32, #tpu.memory_space<vmem>>, vector<1x1x256xf32>
    %37 = vector.shape_cast %36 : vector<1x1x256xf32> to vector<1x256xf32>
    %38 = vector.broadcast %37 : vector<1x256xf32> to vector<4x256xf32>
    %39 = arith.mulf %35, %38 : vector<4x256xf32>
    %c2_37 = arith.constant 2 : index
    %c0_38 = arith.constant 0 : index
    %c0_39 = arith.constant 0 : index
    %40 = vector.load %arg6[%c2_37, %c0_38, %c0_39] : memref<9x4x4xbf16, #tpu.memory_space<vmem>>, vector<1x4x4xbf16>
    %41 = vector.shape_cast %40 : vector<1x4x4xbf16> to vector<4x4xbf16>
    %42 = arith.truncf %39 : vector<4x256xf32> to vector<4x256xbf16>
    %cst_40 = arith.constant dense<0.000000e+00> : vector<4x256xf32>
    %43 = tpu.matmul %41, %42, %cst_40 {dimension_numbers = #tpu.dot_dimension_numbers<[1], [0], [0], [1], [0, 0, 1, 1], [], []>} : vector<4x4xbf16>, vector<4x256xbf16>, vector<4x256xf32> -> vector<4x256xf32>
    %44 = arith.addf %34, %43 : vector<4x256xf32>
    %c1_i32 = arith.constant 1 : i32
    %45 = tpu.dynamic_rotate %1 by %c1_i32 dim 1 : vector<4x256xf32>, i32 -> vector<4x256xf32>
    %c3 = arith.constant 3 : index
    %c0_41 = arith.constant 0 : index
    %c0_42 = arith.constant 0 : index
    %46 = vector.load %arg8[%c3, %c0_41, %c0_42] : memref<9x1x256xf32, #tpu.memory_space<vmem>>, vector<1x1x256xf32>
    %47 = vector.shape_cast %46 : vector<1x1x256xf32> to vector<1x256xf32>
    %48 = vector.broadcast %47 : vector<1x256xf32> to vector<4x256xf32>
    %49 = arith.mulf %45, %48 : vector<4x256xf32>
    %c3_43 = arith.constant 3 : index
    %c0_44 = arith.constant 0 : index
    %c0_45 = arith.constant 0 : index
    %50 = vector.load %arg6[%c3_43, %c0_44, %c0_45] : memref<9x4x4xbf16, #tpu.memory_space<vmem>>, vector<1x4x4xbf16>
    %51 = vector.shape_cast %50 : vector<1x4x4xbf16> to vector<4x4xbf16>
    %52 = arith.truncf %49 : vector<4x256xf32> to vector<4x256xbf16>
    %cst_46 = arith.constant dense<0.000000e+00> : vector<4x256xf32>
    %53 = tpu.matmul %51, %52, %cst_46 {dimension_numbers = #tpu.dot_dimension_numbers<[1], [0], [0], [1], [0, 0, 1, 1], [], []>} : vector<4x4xbf16>, vector<4x256xbf16>, vector<4x256xf32> -> vector<4x256xf32>
    %54 = arith.addf %44, %53 : vector<4x256xf32>
    %c4 = arith.constant 4 : index
    %c0_47 = arith.constant 0 : index
    %c0_48 = arith.constant 0 : index
    %55 = vector.load %arg6[%c4, %c0_47, %c0_48] : memref<9x4x4xbf16, #tpu.memory_space<vmem>>, vector<1x4x4xbf16>
    %56 = vector.shape_cast %55 : vector<1x4x4xbf16> to vector<4x4xbf16>
    %57 = arith.truncf %1 : vector<4x256xf32> to vector<4x256xbf16>
    %cst_49 = arith.constant dense<0.000000e+00> : vector<4x256xf32>
    %58 = tpu.matmul %56, %57, %cst_49 {dimension_numbers = #tpu.dot_dimension_numbers<[1], [0], [0], [1], [0, 0, 1, 1], [], []>} : vector<4x4xbf16>, vector<4x256xbf16>, vector<4x256xf32> -> vector<4x256xf32>
    %59 = arith.addf %54, %58 : vector<4x256xf32>
    %c255_i32 = arith.constant 255 : i32
    %60 = tpu.dynamic_rotate %1 by %c255_i32 dim 1 : vector<4x256xf32>, i32 -> vector<4x256xf32>
    %c5 = arith.constant 5 : index
    %c0_50 = arith.constant 0 : index
    %c0_51 = arith.constant 0 : index
    %61 = vector.load %arg8[%c5, %c0_50, %c0_51] : memref<9x1x256xf32, #tpu.memory_space<vmem>>, vector<1x1x256xf32>
    %62 = vector.shape_cast %61 : vector<1x1x256xf32> to vector<1x256xf32>
    %63 = vector.broadcast %62 : vector<1x256xf32> to vector<4x256xf32>
    %64 = arith.mulf %60, %63 : vector<4x256xf32>
    %c5_52 = arith.constant 5 : index
    %c0_53 = arith.constant 0 : index
    %c0_54 = arith.constant 0 : index
    %65 = vector.load %arg6[%c5_52, %c0_53, %c0_54] : memref<9x4x4xbf16, #tpu.memory_space<vmem>>, vector<1x4x4xbf16>
    %66 = vector.shape_cast %65 : vector<1x4x4xbf16> to vector<4x4xbf16>
    %67 = arith.truncf %64 : vector<4x256xf32> to vector<4x256xbf16>
    %cst_55 = arith.constant dense<0.000000e+00> : vector<4x256xf32>
    %68 = tpu.matmul %66, %67, %cst_55 {dimension_numbers = #tpu.dot_dimension_numbers<[1], [0], [0], [1], [0, 0, 1, 1], [], []>} : vector<4x4xbf16>, vector<4x256xbf16>, vector<4x256xf32> -> vector<4x256xf32>
    %69 = arith.addf %59, %68 : vector<4x256xf32>
    %c241_i32 = arith.constant 241 : i32
    %70 = tpu.dynamic_rotate %1 by %c241_i32 dim 1 : vector<4x256xf32>, i32 -> vector<4x256xf32>
    %c6 = arith.constant 6 : index
    %c0_56 = arith.constant 0 : index
    %c0_57 = arith.constant 0 : index
    %71 = vector.load %arg8[%c6, %c0_56, %c0_57] : memref<9x1x256xf32, #tpu.memory_space<vmem>>, vector<1x1x256xf32>
    %72 = vector.shape_cast %71 : vector<1x1x256xf32> to vector<1x256xf32>
    %73 = vector.broadcast %72 : vector<1x256xf32> to vector<4x256xf32>
    %74 = arith.mulf %70, %73 : vector<4x256xf32>
    %c6_58 = arith.constant 6 : index
    %c0_59 = arith.constant 0 : index
    %c0_60 = arith.constant 0 : index
    %75 = vector.load %arg6[%c6_58, %c0_59, %c0_60] : memref<9x4x4xbf16, #tpu.memory_space<vmem>>, vector<1x4x4xbf16>
    %76 = vector.shape_cast %75 : vector<1x4x4xbf16> to vector<4x4xbf16>
    %77 = arith.truncf %74 : vector<4x256xf32> to vector<4x256xbf16>
    %cst_61 = arith.constant dense<0.000000e+00> : vector<4x256xf32>
    %78 = tpu.matmul %76, %77, %cst_61 {dimension_numbers = #tpu.dot_dimension_numbers<[1], [0], [0], [1], [0, 0, 1, 1], [], []>} : vector<4x4xbf16>, vector<4x256xbf16>, vector<4x256xf32> -> vector<4x256xf32>
    %79 = arith.addf %69, %78 : vector<4x256xf32>
    %c240_i32 = arith.constant 240 : i32
    %80 = tpu.dynamic_rotate %1 by %c240_i32 dim 1 : vector<4x256xf32>, i32 -> vector<4x256xf32>
    %c7 = arith.constant 7 : index
    %c0_62 = arith.constant 0 : index
    %c0_63 = arith.constant 0 : index
    %81 = vector.load %arg8[%c7, %c0_62, %c0_63] : memref<9x1x256xf32, #tpu.memory_space<vmem>>, vector<1x1x256xf32>
    %82 = vector.shape_cast %81 : vector<1x1x256xf32> to vector<1x256xf32>
    %83 = vector.broadcast %82 : vector<1x256xf32> to vector<4x256xf32>
    %84 = arith.mulf %80, %83 : vector<4x256xf32>
    %c7_64 = arith.constant 7 : index
    %c0_65 = arith.constant 0 : index
    %c0_66 = arith.constant 0 : index
    %85 = vector.load %arg6[%c7_64, %c0_65, %c0_66] : memref<9x4x4xbf16, #tpu.memory_space<vmem>>, vector<1x4x4xbf16>
    %86 = vector.shape_cast %85 : vector<1x4x4xbf16> to vector<4x4xbf16>
    %87 = arith.truncf %84 : vector<4x256xf32> to vector<4x256xbf16>
    %cst_67 = arith.constant dense<0.000000e+00> : vector<4x256xf32>
    %88 = tpu.matmul %86, %87, %cst_67 {dimension_numbers = #tpu.dot_dimension_numbers<[1], [0], [0], [1], [0, 0, 1, 1], [], []>} : vector<4x4xbf16>, vector<4x256xbf16>, vector<4x256xf32> -> vector<4x256xf32>
    %89 = arith.addf %79, %88 : vector<4x256xf32>
    %c239_i32 = arith.constant 239 : i32
    %90 = tpu.dynamic_rotate %1 by %c239_i32 dim 1 : vector<4x256xf32>, i32 -> vector<4x256xf32>
    %c8 = arith.constant 8 : index
    %c0_68 = arith.constant 0 : index
    %c0_69 = arith.constant 0 : index
    %91 = vector.load %arg8[%c8, %c0_68, %c0_69] : memref<9x1x256xf32, #tpu.memory_space<vmem>>, vector<1x1x256xf32>
    %92 = vector.shape_cast %91 : vector<1x1x256xf32> to vector<1x256xf32>
    %93 = vector.broadcast %92 : vector<1x256xf32> to vector<4x256xf32>
    %94 = arith.mulf %90, %93 : vector<4x256xf32>
    %c8_70 = arith.constant 8 : index
    %c0_71 = arith.constant 0 : index
    %c0_72 = arith.constant 0 : index
    %95 = vector.load %arg6[%c8_70, %c0_71, %c0_72] : memref<9x4x4xbf16, #tpu.memory_space<vmem>>, vector<1x4x4xbf16>
    %96 = vector.shape_cast %95 : vector<1x4x4xbf16> to vector<4x4xbf16>
    %97 = arith.truncf %94 : vector<4x256xf32> to vector<4x256xbf16>
    %cst_73 = arith.constant dense<0.000000e+00> : vector<4x256xf32>
    %98 = tpu.matmul %96, %97, %cst_73 {dimension_numbers = #tpu.dot_dimension_numbers<[1], [0], [0], [1], [0, 0, 1, 1], [], []>} : vector<4x4xbf16>, vector<4x256xbf16>, vector<4x256xf32> -> vector<4x256xf32>
    %99 = arith.addf %89, %98 : vector<4x256xf32>
    %100 = vector.broadcast %10 : vector<4x1xf32> to vector<4x256xf32>
    %101 = arith.mulf %3, %100 : vector<4x256xf32>
    %cst_74 = arith.constant 1.000000e+00 : f32
    %102 = vector.broadcast %cst_74 : f32 to vector<4x256xf32>
    %103 = arith.subf %102, %5 : vector<4x256xf32>
    %104 = arith.mulf %101, %103 : vector<4x256xf32>
    %105 = arith.addf %104, %99 : vector<4x256xf32>
    %106 = vector.broadcast %11 : vector<4x1xf32> to vector<4x256xf32>
    %107 = arith.cmpf ogt, %105, %106 : vector<4x256xf32>
    %108 = arith.extui %107 : vector<4x256xi1> to vector<4x256xi32>
    %109 = arith.sitofp %108 : vector<4x256xi32> to vector<4x256xf32>
    %cst_75 = arith.constant 0.000000e+00 : f32
    %110 = vector.broadcast %cst_75 : f32 to vector<4x256xf32>
    %c17_i32_76 = arith.constant 17 : i32
    %111 = tpu.dynamic_rotate %109 by %c17_i32_76 dim 1 : vector<4x256xf32>, i32 -> vector<4x256xf32>
    %c0_77 = arith.constant 0 : index
    %c0_78 = arith.constant 0 : index
    %c0_79 = arith.constant 0 : index
    %112 = vector.load %arg8[%c0_77, %c0_78, %c0_79] : memref<9x1x256xf32, #tpu.memory_space<vmem>>, vector<1x1x256xf32>
    %113 = vector.shape_cast %112 : vector<1x1x256xf32> to vector<1x256xf32>
    %114 = vector.broadcast %113 : vector<1x256xf32> to vector<4x256xf32>
    %115 = arith.mulf %111, %114 : vector<4x256xf32>
    %c0_80 = arith.constant 0 : index
    %c0_81 = arith.constant 0 : index
    %c0_82 = arith.constant 0 : index
    %116 = vector.load %arg7[%c0_80, %c0_81, %c0_82] : memref<9x4x4xbf16, #tpu.memory_space<vmem>>, vector<1x4x4xbf16>
    %117 = vector.shape_cast %116 : vector<1x4x4xbf16> to vector<4x4xbf16>
    %118 = arith.truncf %115 : vector<4x256xf32> to vector<4x256xbf16>
    %cst_83 = arith.constant dense<0.000000e+00> : vector<4x256xf32>
    %119 = tpu.matmul %117, %118, %cst_83 {dimension_numbers = #tpu.dot_dimension_numbers<[1], [0], [0], [1], [0, 0, 1, 1], [], []>} : vector<4x4xbf16>, vector<4x256xbf16>, vector<4x256xf32> -> vector<4x256xf32>
    %120 = arith.addf %110, %119 : vector<4x256xf32>
    %c16_i32_84 = arith.constant 16 : i32
    %121 = tpu.dynamic_rotate %109 by %c16_i32_84 dim 1 : vector<4x256xf32>, i32 -> vector<4x256xf32>
    %c1_85 = arith.constant 1 : index
    %c0_86 = arith.constant 0 : index
    %c0_87 = arith.constant 0 : index
    %122 = vector.load %arg8[%c1_85, %c0_86, %c0_87] : memref<9x1x256xf32, #tpu.memory_space<vmem>>, vector<1x1x256xf32>
    %123 = vector.shape_cast %122 : vector<1x1x256xf32> to vector<1x256xf32>
    %124 = vector.broadcast %123 : vector<1x256xf32> to vector<4x256xf32>
    %125 = arith.mulf %121, %124 : vector<4x256xf32>
    %c1_88 = arith.constant 1 : index
    %c0_89 = arith.constant 0 : index
    %c0_90 = arith.constant 0 : index
    %126 = vector.load %arg7[%c1_88, %c0_89, %c0_90] : memref<9x4x4xbf16, #tpu.memory_space<vmem>>, vector<1x4x4xbf16>
    %127 = vector.shape_cast %126 : vector<1x4x4xbf16> to vector<4x4xbf16>
    %128 = arith.truncf %125 : vector<4x256xf32> to vector<4x256xbf16>
    %cst_91 = arith.constant dense<0.000000e+00> : vector<4x256xf32>
    %129 = tpu.matmul %127, %128, %cst_91 {dimension_numbers = #tpu.dot_dimension_numbers<[1], [0], [0], [1], [0, 0, 1, 1], [], []>} : vector<4x4xbf16>, vector<4x256xbf16>, vector<4x256xf32> -> vector<4x256xf32>
    %130 = arith.addf %120, %129 : vector<4x256xf32>
    %c15_i32_92 = arith.constant 15 : i32
    %131 = tpu.dynamic_rotate %109 by %c15_i32_92 dim 1 : vector<4x256xf32>, i32 -> vector<4x256xf32>
    %c2_93 = arith.constant 2 : index
    %c0_94 = arith.constant 0 : index
    %c0_95 = arith.constant 0 : index
    %132 = vector.load %arg8[%c2_93, %c0_94, %c0_95] : memref<9x1x256xf32, #tpu.memory_space<vmem>>, vector<1x1x256xf32>
    %133 = vector.shape_cast %132 : vector<1x1x256xf32> to vector<1x256xf32>
    %134 = vector.broadcast %133 : vector<1x256xf32> to vector<4x256xf32>
    %135 = arith.mulf %131, %134 : vector<4x256xf32>
    %c2_96 = arith.constant 2 : index
    %c0_97 = arith.constant 0 : index
    %c0_98 = arith.constant 0 : index
    %136 = vector.load %arg7[%c2_96, %c0_97, %c0_98] : memref<9x4x4xbf16, #tpu.memory_space<vmem>>, vector<1x4x4xbf16>
    %137 = vector.shape_cast %136 : vector<1x4x4xbf16> to vector<4x4xbf16>
    %138 = arith.truncf %135 : vector<4x256xf32> to vector<4x256xbf16>
    %cst_99 = arith.constant dense<0.000000e+00> : vector<4x256xf32>
    %139 = tpu.matmul %137, %138, %cst_99 {dimension_numbers = #tpu.dot_dimension_numbers<[1], [0], [0], [1], [0, 0, 1, 1], [], []>} : vector<4x4xbf16>, vector<4x256xbf16>, vector<4x256xf32> -> vector<4x256xf32>
    %140 = arith.addf %130, %139 : vector<4x256xf32>
    %c1_i32_100 = arith.constant 1 : i32
    %141 = tpu.dynamic_rotate %109 by %c1_i32_100 dim 1 : vector<4x256xf32>, i32 -> vector<4x256xf32>
    %c3_101 = arith.constant 3 : index
    %c0_102 = arith.constant 0 : index
    %c0_103 = arith.constant 0 : index
    %142 = vector.load %arg8[%c3_101, %c0_102, %c0_103] : memref<9x1x256xf32, #tpu.memory_space<vmem>>, vector<1x1x256xf32>
    %143 = vector.shape_cast %142 : vector<1x1x256xf32> to vector<1x256xf32>
    %144 = vector.broadcast %143 : vector<1x256xf32> to vector<4x256xf32>
    %145 = arith.mulf %141, %144 : vector<4x256xf32>
    %c3_104 = arith.constant 3 : index
    %c0_105 = arith.constant 0 : index
    %c0_106 = arith.constant 0 : index
    %146 = vector.load %arg7[%c3_104, %c0_105, %c0_106] : memref<9x4x4xbf16, #tpu.memory_space<vmem>>, vector<1x4x4xbf16>
    %147 = vector.shape_cast %146 : vector<1x4x4xbf16> to vector<4x4xbf16>
    %148 = arith.truncf %145 : vector<4x256xf32> to vector<4x256xbf16>
    %cst_107 = arith.constant dense<0.000000e+00> : vector<4x256xf32>
    %149 = tpu.matmul %147, %148, %cst_107 {dimension_numbers = #tpu.dot_dimension_numbers<[1], [0], [0], [1], [0, 0, 1, 1], [], []>} : vector<4x4xbf16>, vector<4x256xbf16>, vector<4x256xf32> -> vector<4x256xf32>
    %150 = arith.addf %140, %149 : vector<4x256xf32>
    %c4_108 = arith.constant 4 : index
    %c0_109 = arith.constant 0 : index
    %c0_110 = arith.constant 0 : index
    %151 = vector.load %arg7[%c4_108, %c0_109, %c0_110] : memref<9x4x4xbf16, #tpu.memory_space<vmem>>, vector<1x4x4xbf16>
    %152 = vector.shape_cast %151 : vector<1x4x4xbf16> to vector<4x4xbf16>
    %153 = arith.truncf %109 : vector<4x256xf32> to vector<4x256xbf16>
    %cst_111 = arith.constant dense<0.000000e+00> : vector<4x256xf32>
    %154 = tpu.matmul %152, %153, %cst_111 {dimension_numbers = #tpu.dot_dimension_numbers<[1], [0], [0], [1], [0, 0, 1, 1], [], []>} : vector<4x4xbf16>, vector<4x256xbf16>, vector<4x256xf32> -> vector<4x256xf32>
    %155 = arith.addf %150, %154 : vector<4x256xf32>
    %c255_i32_112 = arith.constant 255 : i32
    %156 = tpu.dynamic_rotate %109 by %c255_i32_112 dim 1 : vector<4x256xf32>, i32 -> vector<4x256xf32>
    %c5_113 = arith.constant 5 : index
    %c0_114 = arith.constant 0 : index
    %c0_115 = arith.constant 0 : index
    %157 = vector.load %arg8[%c5_113, %c0_114, %c0_115] : memref<9x1x256xf32, #tpu.memory_space<vmem>>, vector<1x1x256xf32>
    %158 = vector.shape_cast %157 : vector<1x1x256xf32> to vector<1x256xf32>
    %159 = vector.broadcast %158 : vector<1x256xf32> to vector<4x256xf32>
    %160 = arith.mulf %156, %159 : vector<4x256xf32>
    %c5_116 = arith.constant 5 : index
    %c0_117 = arith.constant 0 : index
    %c0_118 = arith.constant 0 : index
    %161 = vector.load %arg7[%c5_116, %c0_117, %c0_118] : memref<9x4x4xbf16, #tpu.memory_space<vmem>>, vector<1x4x4xbf16>
    %162 = vector.shape_cast %161 : vector<1x4x4xbf16> to vector<4x4xbf16>
    %163 = arith.truncf %160 : vector<4x256xf32> to vector<4x256xbf16>
    %cst_119 = arith.constant dense<0.000000e+00> : vector<4x256xf32>
    %164 = tpu.matmul %162, %163, %cst_119 {dimension_numbers = #tpu.dot_dimension_numbers<[1], [0], [0], [1], [0, 0, 1, 1], [], []>} : vector<4x4xbf16>, vector<4x256xbf16>, vector<4x256xf32> -> vector<4x256xf32>
    %165 = arith.addf %155, %164 : vector<4x256xf32>
    %c241_i32_120 = arith.constant 241 : i32
    %166 = tpu.dynamic_rotate %109 by %c241_i32_120 dim 1 : vector<4x256xf32>, i32 -> vector<4x256xf32>
    %c6_121 = arith.constant 6 : index
    %c0_122 = arith.constant 0 : index
    %c0_123 = arith.constant 0 : index
    %167 = vector.load %arg8[%c6_121, %c0_122, %c0_123] : memref<9x1x256xf32, #tpu.memory_space<vmem>>, vector<1x1x256xf32>
    %168 = vector.shape_cast %167 : vector<1x1x256xf32> to vector<1x256xf32>
    %169 = vector.broadcast %168 : vector<1x256xf32> to vector<4x256xf32>
    %170 = arith.mulf %166, %169 : vector<4x256xf32>
    %c6_124 = arith.constant 6 : index
    %c0_125 = arith.constant 0 : index
    %c0_126 = arith.constant 0 : index
    %171 = vector.load %arg7[%c6_124, %c0_125, %c0_126] : memref<9x4x4xbf16, #tpu.memory_space<vmem>>, vector<1x4x4xbf16>
    %172 = vector.shape_cast %171 : vector<1x4x4xbf16> to vector<4x4xbf16>
    %173 = arith.truncf %170 : vector<4x256xf32> to vector<4x256xbf16>
    %cst_127 = arith.constant dense<0.000000e+00> : vector<4x256xf32>
    %174 = tpu.matmul %172, %173, %cst_127 {dimension_numbers = #tpu.dot_dimension_numbers<[1], [0], [0], [1], [0, 0, 1, 1], [], []>} : vector<4x4xbf16>, vector<4x256xbf16>, vector<4x256xf32> -> vector<4x256xf32>
    %175 = arith.addf %165, %174 : vector<4x256xf32>
    %c240_i32_128 = arith.constant 240 : i32
    %176 = tpu.dynamic_rotate %109 by %c240_i32_128 dim 1 : vector<4x256xf32>, i32 -> vector<4x256xf32>
    %c7_129 = arith.constant 7 : index
    %c0_130 = arith.constant 0 : index
    %c0_131 = arith.constant 0 : index
    %177 = vector.load %arg8[%c7_129, %c0_130, %c0_131] : memref<9x1x256xf32, #tpu.memory_space<vmem>>, vector<1x1x256xf32>
    %178 = vector.shape_cast %177 : vector<1x1x256xf32> to vector<1x256xf32>
    %179 = vector.broadcast %178 : vector<1x256xf32> to vector<4x256xf32>
    %180 = arith.mulf %176, %179 : vector<4x256xf32>
    %c7_132 = arith.constant 7 : index
    %c0_133 = arith.constant 0 : index
    %c0_134 = arith.constant 0 : index
    %181 = vector.load %arg7[%c7_132, %c0_133, %c0_134] : memref<9x4x4xbf16, #tpu.memory_space<vmem>>, vector<1x4x4xbf16>
    %182 = vector.shape_cast %181 : vector<1x4x4xbf16> to vector<4x4xbf16>
    %183 = arith.truncf %180 : vector<4x256xf32> to vector<4x256xbf16>
    %cst_135 = arith.constant dense<0.000000e+00> : vector<4x256xf32>
    %184 = tpu.matmul %182, %183, %cst_135 {dimension_numbers = #tpu.dot_dimension_numbers<[1], [0], [0], [1], [0, 0, 1, 1], [], []>} : vector<4x4xbf16>, vector<4x256xbf16>, vector<4x256xf32> -> vector<4x256xf32>
    %185 = arith.addf %175, %184 : vector<4x256xf32>
    %c239_i32_136 = arith.constant 239 : i32
    %186 = tpu.dynamic_rotate %109 by %c239_i32_136 dim 1 : vector<4x256xf32>, i32 -> vector<4x256xf32>
    %c8_137 = arith.constant 8 : index
    %c0_138 = arith.constant 0 : index
    %c0_139 = arith.constant 0 : index
    %187 = vector.load %arg8[%c8_137, %c0_138, %c0_139] : memref<9x1x256xf32, #tpu.memory_space<vmem>>, vector<1x1x256xf32>
    %188 = vector.shape_cast %187 : vector<1x1x256xf32> to vector<1x256xf32>
    %189 = vector.broadcast %188 : vector<1x256xf32> to vector<4x256xf32>
    %190 = arith.mulf %186, %189 : vector<4x256xf32>
    %c8_140 = arith.constant 8 : index
    %c0_141 = arith.constant 0 : index
    %c0_142 = arith.constant 0 : index
    %191 = vector.load %arg7[%c8_140, %c0_141, %c0_142] : memref<9x4x4xbf16, #tpu.memory_space<vmem>>, vector<1x4x4xbf16>
    %192 = vector.shape_cast %191 : vector<1x4x4xbf16> to vector<4x4xbf16>
    %193 = arith.truncf %190 : vector<4x256xf32> to vector<4x256xbf16>
    %cst_143 = arith.constant dense<0.000000e+00> : vector<4x256xf32>
    %194 = tpu.matmul %192, %193, %cst_143 {dimension_numbers = #tpu.dot_dimension_numbers<[1], [0], [0], [1], [0, 0, 1, 1], [], []>} : vector<4x4xbf16>, vector<4x256xbf16>, vector<4x256xf32> -> vector<4x256xf32>
    %195 = arith.addf %185, %194 : vector<4x256xf32>
    %196 = vector.broadcast %12 : vector<4x1xf32> to vector<4x256xf32>
    %197 = arith.mulf %7, %196 : vector<4x256xf32>
    %cst_144 = arith.constant 1.000000e+00 : f32
    %198 = vector.broadcast %cst_144 : f32 to vector<4x256xf32>
    %199 = arith.subf %198, %9 : vector<4x256xf32>
    %200 = arith.mulf %197, %199 : vector<4x256xf32>
    %201 = arith.addf %200, %195 : vector<4x256xf32>
    %202 = vector.broadcast %13 : vector<4x1xf32> to vector<4x256xf32>
    %203 = arith.cmpf ogt, %201, %202 : vector<4x256xf32>
    %204 = arith.extui %203 : vector<4x256xi1> to vector<4x256xi32>
    %205 = arith.sitofp %204 : vector<4x256xi32> to vector<4x256xf32>
    %206 = arith.addf %205, %1 : vector<4x256xf32>
    %c0_145 = arith.constant 0 : index
    %c0_146 = arith.constant 0 : index
    %c0_147 = arith.constant 0 : index
    %207 = vector.load %arg13[%c0_145, %c0_146, %c0_147] : memref<1x4x256xf32, #tpu.memory_space<vmem>>, vector<1x4x256xf32>
    %208 = vector.shape_cast %207 : vector<1x4x256xf32> to vector<4x256xf32>
    %209 = vector.shape_cast %206 : vector<4x256xf32> to vector<1x4x256xf32>
    tpu.vector_store %arg13[%c0_145, %c0_146, %c0_147], %209 {strides = array<i32>} : memref<1x4x256xf32, #tpu.memory_space<vmem>>, vector<1x4x256xf32>,
    %c0_148 = arith.constant 0 : index
    %c0_149 = arith.constant 0 : index
    %c0_150 = arith.constant 0 : index
    %210 = vector.load %arg14[%c0_148, %c0_149, %c0_150] : memref<1x4x256xf32, #tpu.memory_space<vmem>>, vector<1x4x256xf32>
    %211 = vector.shape_cast %210 : vector<1x4x256xf32> to vector<4x256xf32>
    %212 = vector.shape_cast %105 : vector<4x256xf32> to vector<1x4x256xf32>
    tpu.vector_store %arg14[%c0_148, %c0_149, %c0_150], %212 {strides = array<i32>} : memref<1x4x256xf32, #tpu.memory_space<vmem>>, vector<1x4x256xf32>,
    %213 = arith.truncf %109 : vector<4x256xf32> to vector<4x256xbf16>
    %c0_151 = arith.constant 0 : index
    %c0_152 = arith.constant 0 : index
    %c0_153 = arith.constant 0 : index
    %214 = vector.load %arg15[%c0_151, %c0_152, %c0_153] : memref<1x4x256xbf16, #tpu.memory_space<vmem>>, vector<1x4x256xbf16>
    %215 = vector.shape_cast %214 : vector<1x4x256xbf16> to vector<4x256xbf16>
    %216 = vector.shape_cast %213 : vector<4x256xbf16> to vector<1x4x256xbf16>
    tpu.vector_store %arg15[%c0_151, %c0_152, %c0_153], %216 {strides = array<i32>} : memref<1x4x256xbf16, #tpu.memory_space<vmem>>, vector<1x4x256xbf16>,
    %c0_154 = arith.constant 0 : index
    %c0_155 = arith.constant 0 : index
    %c0_156 = arith.constant 0 : index
    %217 = vector.load %arg16[%c0_154, %c0_155, %c0_156] : memref<1x4x256xf32, #tpu.memory_space<vmem>>, vector<1x4x256xf32>
    %218 = vector.shape_cast %217 : vector<1x4x256xf32> to vector<4x256xf32>
    %219 = vector.shape_cast %201 : vector<4x256xf32> to vector<1x4x256xf32>
    tpu.vector_store %arg16[%c0_154, %c0_155, %c0_156], %219 {strides = array<i32>} : memref<1x4x256xf32, #tpu.memory_space<vmem>>, vector<1x4x256xf32>,
    %220 = arith.truncf %205 : vector<4x256xf32> to vector<4x256xbf16>
    %c0_157 = arith.constant 0 : index
    %c0_158 = arith.constant 0 : index
    %c0_159 = arith.constant 0 : index
    %221 = vector.load %arg17[%c0_157, %c0_158, %c0_159] : memref<1x4x256xbf16, #tpu.memory_space<vmem>>, vector<1x4x256xbf16>
    %222 = vector.shape_cast %221 : vector<1x4x256xbf16> to vector<4x256xbf16>
    %223 = vector.shape_cast %220 : vector<4x256xbf16> to vector<1x4x256xbf16>
    tpu.vector_store %arg17[%c0_157, %c0_158, %c0_159], %223 {strides = array<i32>} : memref<1x4x256xbf16, #tpu.memory_space<vmem>>, vector<1x4x256xbf16>,
    return
  }
  func.func @transform_0(%arg0: i32) -> (i32, i32, i32) {
    %c0_i32 = arith.constant 0 : i32
    %c0_i32_0 = arith.constant 0 : i32
    %c0_i32_1 = arith.constant 0 : i32
    return %arg0, %c0_i32, %c0_i32_0 : i32, i32, i32
  }
  func.func @transform_1(%arg0: i32) -> (i32, i32, i32) {
    %c0_i32 = arith.constant 0 : i32
    %c0_i32_0 = arith.constant 0 : i32
    %c0_i32_1 = arith.constant 0 : i32
    return %arg0, %c0_i32, %c0_i32_0 : i32, i32, i32
  }
  func.func @transform_2(%arg0: i32) -> (i32, i32, i32) {
    %c0_i32 = arith.constant 0 : i32
    %c0_i32_0 = arith.constant 0 : i32
    %c0_i32_1 = arith.constant 0 : i32
    return %arg0, %c0_i32, %c0_i32_0 : i32, i32, i32
  }
  func.func @transform_3(%arg0: i32) -> (i32, i32, i32) {
    %c0_i32 = arith.constant 0 : i32
    %c0_i32_0 = arith.constant 0 : i32
    %c0_i32_1 = arith.constant 0 : i32
    return %arg0, %c0_i32, %c0_i32_0 : i32, i32, i32
  }
  func.func @transform_4(%arg0: i32) -> (i32, i32, i32) {
    %c0_i32 = arith.constant 0 : i32
    %c0_i32_0 = arith.constant 0 : i32
    %c0_i32_1 = arith.constant 0 : i32
    return %arg0, %c0_i32, %c0_i32_0 : i32, i32, i32
  }
  func.func @transform_5(%arg0: i32) -> (i32, i32, i32) {
    %c0_i32 = arith.constant 0 : i32
    %c0_i32_0 = arith.constant 0 : i32
    %c0_i32_1 = arith.constant 0 : i32
    %c0_i32_2 = arith.constant 0 : i32
    return %c0_i32, %c0_i32_0, %c0_i32_1 : i32, i32, i32
  }
  func.func @transform_6(%arg0: i32) -> (i32, i32, i32) {
    %c0_i32 = arith.constant 0 : i32
    %c0_i32_0 = arith.constant 0 : i32
    %c0_i32_1 = arith.constant 0 : i32
    %c0_i32_2 = arith.constant 0 : i32
    return %c0_i32, %c0_i32_0, %c0_i32_1 : i32, i32, i32
  }
  func.func @transform_7(%arg0: i32) -> (i32, i32, i32) {
    %c0_i32 = arith.constant 0 : i32
    %c0_i32_0 = arith.constant 0 : i32
    %c0_i32_1 = arith.constant 0 : i32
    %c0_i32_2 = arith.constant 0 : i32
    return %c0_i32, %c0_i32_0, %c0_i32_1 : i32, i32, i32
  }
  func.func @transform_8(%arg0: i32) -> (i32, i32) {
    %c0_i32 = arith.constant 0 : i32
    %c0_i32_0 = arith.constant 0 : i32
    %c0_i32_1 = arith.constant 0 : i32
    return %c0_i32, %c0_i32_0 : i32, i32
  }
  func.func @transform_9(%arg0: i32) -> (i32, i32) {
    %c0_i32 = arith.constant 0 : i32
    %c0_i32_0 = arith.constant 0 : i32
    %c0_i32_1 = arith.constant 0 : i32
    return %c0_i32, %c0_i32_0 : i32, i32
  }
  func.func @transform_10(%arg0: i32) -> (i32, i32) {
    %c0_i32 = arith.constant 0 : i32
    %c0_i32_0 = arith.constant 0 : i32
    %c0_i32_1 = arith.constant 0 : i32
    return %c0_i32, %c0_i32_0 : i32, i32
  }
  func.func @transform_11(%arg0: i32) -> (i32, i32) {
    %c0_i32 = arith.constant 0 : i32
    %c0_i32_0 = arith.constant 0 : i32
    %c0_i32_1 = arith.constant 0 : i32
    return %c0_i32, %c0_i32_0 : i32, i32
  }
  func.func @transform_12(%arg0: i32) -> (i32, i32, i32) {
    %c0_i32 = arith.constant 0 : i32
    %c0_i32_0 = arith.constant 0 : i32
    %c0_i32_1 = arith.constant 0 : i32
    return %arg0, %c0_i32, %c0_i32_0 : i32, i32, i32
  }
  func.func @transform_13(%arg0: i32) -> (i32, i32, i32) {
    %c0_i32 = arith.constant 0 : i32
    %c0_i32_0 = arith.constant 0 : i32
    %c0_i32_1 = arith.constant 0 : i32
    return %arg0, %c0_i32, %c0_i32_0 : i32, i32, i32
  }
  func.func @transform_14(%arg0: i32) -> (i32, i32, i32) {
    %c0_i32 = arith.constant 0 : i32
    %c0_i32_0 = arith.constant 0 : i32
    %c0_i32_1 = arith.constant 0 : i32
    return %arg0, %c0_i32, %c0_i32_0 : i32, i32, i32
  }
  func.func @transform_15(%arg0: i32) -> (i32, i32, i32) {
    %c0_i32 = arith.constant 0 : i32
    %c0_i32_0 = arith.constant 0 : i32
    %c0_i32_1 = arith.constant 0 : i32
    return %arg0, %c0_i32, %c0_i32_0 : i32, i32, i32
  }
  func.func @transform_16(%arg0: i32) -> (i32, i32, i32) {
    %c0_i32 = arith.constant 0 : i32
    %c0_i32_0 = arith.constant 0 : i32
    %c0_i32_1 = arith.constant 0 : i32
    return %arg0, %c0_i32, %c0_i32_0 : i32, i32, i32
  }
}

</mosaic_0001>

<bundles_post_ra>
// kernel: tpu_custom_call.1
= control target key start
LH: loop header
LB: loop body
LE: loop exit
PB: predicated region body
PF: predicated region fallthrough
CT: control target
= control target key end

     0   :  { %s3703_s0 = inlined_call_operand.vmem [shape: f32[2,4,256], index: 0, kind: input, shape index: {}]   ;;  %s3704_s1 = inlined_call_operand.vmem [shape: f32[2,4,256], index: 1, kind: input, shape index: {}]   ;;  %s3705_s2 = inlined_call_operand.vmem [shape: f32[2,4,256], index: 2, kind: input, shape index: {}]   ;;  %s3706_s3 = inlined_call_operand.vmem [shape: f32[2,4,256], index: 3, kind: input, shape index: {}]   ;;  %s3707_s4 = inlined_call_operand.hbm [shape: f32[2,4,256], index: 4, kind: input, shape index: {}]   ;;  %s3708_s5 = inlined_call_operand.vmem [shape: bf16[9,4,4], index: 5, kind: input, shape index: {}]   ;;  %s3709_s6 = inlined_call_operand.vmem [shape: bf16[9,4,4], index: 6, kind: input, shape index: {}]   ;;  %s3710_s7 = inlined_call_operand.vmem [shape: f32[9,1,256], index: 7, kind: input, shape index: {}]   ;;  %s3711_s8 = inlined_call_operand.vmem [shape: f32[4,1], index: 8, kind: input, shape index: {}]   ;;  %s3712_s9 = inlined_call_operand.vmem [shape: f32[4,1], index: 9, kind: input, shape index: {}]   ;;  %s3713_s10 = inlined_call_operand.vmem [shape: f32[4,1], index: 10, kind: input, shape index: {}]   ;;  %s3714_s11 = inlined_call_operand.vmem [shape: f32[4,1], index: 11, kind: input, shape index: {}]   ;;  %s3715_s12 = inlined_call_operand.hbm [shape: f32[2,4,256], index: 12, kind: output, shape index: {0}]   ;;  %s3716_s13 = inlined_call_operand.hbm [shape: f32[2,4,256], index: 13, kind: output, shape index: {1}]   ;;  %s3717_s14 = inlined_call_operand.hbm [shape: bf16[2,4,256], index: 14, kind: output, shape index: {2}]   ;;  %s3718_s15 = inlined_call_operand.hbm [shape: f32[2,4,256], index: 15, kind: output, shape index: {3}]   ;;  %s3719_s16 = inlined_call_operand.hbm [shape: bf16[2,4,256], index: 16, kind: output, shape index: {4}]  }
   0x1   :  { %3739 = sst [smem:[#allocation20_spill]] %s3703_s0 }
   0x2   :  { %3740 = sst [smem:[#allocation21_spill]] %s3704_s1 }
   0x3   :  { %3741 = sst [smem:[#allocation22_spill]] %s3705_s2 }
   0x4   :  { %3742 = sst [smem:[#allocation23_spill]] %s3706_s3 }
   0x5   :  { %3743 = sst [smem:[#allocation24_spill]] %s3707_s4 }
   0x6   :  { %3744 = sst [smem:[#allocation25_spill]] %s3708_s5 }
   0x7   :  { %3745 = sst [smem:[#allocation26_spill]] %s3709_s6 }
   0x8   :  { %3746 = sst [smem:[#allocation27_spill]] %s3715_s12 }
   0x9   :  { %3747 = sst [smem:[#allocation28_spill]] %s3719_s16 }
   0xa   :  { %22 = vsyncpa [#allocation3], 0 }
   0xb   :  { %24 = vsyncpa [#allocation3 + $0x1], 0 }
   0xc   :  { %25 = vsyncpa [#allocation4], 0 }
   0xd   :  { %27 = vsyncpa [#allocation4 + $0x1], 0 }
   0xe   :  { %28 = vsyncpa [#allocation7], 0 }
   0xf   :  { %30 = vsyncpa [#allocation7 + $0x1], 0 }
  0x10   :  { %31 = vsyncpa [#allocation10], 0 }
  0x11   :  { %33 = vsyncpa [#allocation10 + $0x1], 0  ;;  %s2961_s21 = smov 0   ;;  %s2963_s22 = smov 0  }
  0x12   :  { %s2965_s23 = smov 0   ;;  %s2967_s24 = smov 0  }
  0x13 LB: > { %3748 = sst [smem:[#allocation16_spill]] %s2845_s21  ;;  %s2982_s25 = sadd.s32 4294967295, %s2857_s24   ;;  %s2857_s24 = sphi %s2967_s24, %s3786_s24   ;;  %s2853_s23 = sphi %s2965_s23, %s3788_s23   ;;  %s2849_s22 = sphi %s2963_s22, %s3790_s22   ;;  %s2845_s21 = sphi %s2961_s21, %s3789_s21  }
  0x14   : > { %3749 = sst [smem:[#allocation17_spill]] %s2853_s23  ;;  %s3723_s26 = sadd.s32 4294967294, %s2857_s24  }
  0x15   : > { %s2986_s27 = sadd.s32 1, %s2857_s24   ;;  %s150_s28 = sadd.s32 1, %s2853_s23 }
  0x16   : > { %3750 = sst [smem:[#allocation18_spill]] %s2986_s27  ;;  %s147_s29 = ssub.s32 %s2857_s24, %s2986_s27 }
  0x17   : > { %p157_p0 = scmp.ne.s32.totalorder %s2853_s23, %s2849_s22  ;;  %p148_p1 = scmp.eq.s32.totalorder %s147_s29, 0 }
  0x18   : > { %p158_p2 = scmp.eq.s32.totalorder %s2857_s24, 0  ;;  %p163_p3 = scmp.ne.s32.totalorder %s2849_s22, %s2845_s21 }
  0x19   : > { %p164_p4 = scmp.eq.s32.totalorder %s2982_s25, 0  ;;  %p334_p7 = scmp.eq.s32.totalorder %s2982_s25, 1 }
  0x1a   : > { %s2998_s30 = scalar_select %p148_p1, %s2853_s23, %s150_s28  }
  0x1b   : > { %p3000_p5 = por %p158_p2, %p157_p0  ;;  %p3004_p6 = por %p164_p4, %p163_p3 }
  0x1c   : > { %3751 = sst [smem:[#allocation19_spill]] %s2998_s30  ;;  %p340_p8 = scmp.eq.s32.totalorder %s3723_s26, 1 }
  0x1d   : > { %p2553_p10 = scmp.lt.s32.totalorder %s2857_s24, 2  ;;  %p3013_p11 = por %p334_p7, %p157_p0 }
  0x1e   : > { %p3017_p12 = por %p340_p8, %p163_p3  ;;  %s517_s20 = sand.u32 1, %s2853_s23  }
  0x1f   : > { %s3754_s18 = scalar_select %p3013_p11, 1, 0 }
  0x20   : > { %s3755_s19 = scalar_select %p3017_p12, 1, 0 }
  0x21   : > { %s2447_s28 = sshll.u32 %s2857_s24, 7  ;;  %s2347_s29 = sshll.u32 %s517_s20, 3 }
  0x22   : > { %s3756_s4 = sld [smem:[#allocation24_spill]]  ;;  %s521_s26 = scalar_lea.vmem [#allocation2], %s2347_s29 }
  0x23   : > { %s529_s16 = sshll.u32 %s521_s26, 4  ;;  %p3030_p13 = pnand %p2553_p10, %p3000_p5  ;;  %s3034_s16 = int_to_ptr.vmem [resolvable:$true] %s529_s16 }
  0x24   : > { %s518_s27 = scalar_lea.sflag [#allocation3], %s517_s20 }
  0x25   : > { %p2643_p3 = pneg %p3030_p13 }
  0x28   : > { %s3026_s21 = scalar_lea.hbm %s3756_s4, %s2447_s28  ;;  %s2646_s28 = scalar_lea.hbm %s3756_s4, 256 }
  0x29   : > { %s2641_s30 = scalar_lea.hbm %s3026_s21, 128  ;;  %p2647_p5 = scmp.lt.u32.totalorder %s3026_s21, %s3756_s4 }
  0x2a   : > { %p2642_p2 = scmp.ne.s32.totalorder %s3026_s21, %s2641_s30  ;;  %p2648_p8 = scmp.lt.u32.totalorder %s2646_s28, %s2641_s30 }
  0x2b   : > { %p2650_p9 = scmp.lt.u32.totalorder %s2641_s30, %s3026_s21 }
  0x2c   : > { %p2644_p4 = pnand %p2643_p3, %p2642_p2  ;;  %p2649_p10 = por %p2648_p8, %p2647_p5 }
  0x2e   : > { %p2645_p7 = pneg %p2644_p4  ;;  %p2651_p0 = por %p2650_p9, %p2649_p10 }
  0x30   : > { %p2652_p1 = pnand %p2651_p0, %p2645_p7 }
  0x32   : > { %2655 = shalt.err (!%p2652_p1)
}
  0x33   : > { %s2656_s20 = scalar_lea.vmem %s3034_s16, 128  ;;  %s2859_s26 = smov [#allocation2]  }
  0x34   : > { %p2657_p2 = scmp.ne.s32.totalorder %s3034_s16, %s2656_s20  ;;  %s2661_s0 = sshll.u32 %s2859_s26, 4  ;;  %s2662_s0 = int_to_ptr.vmem [resolvable:$false] %s2661_s0 }
  0x35   : > { %s2663_s23 = scalar_lea.vmem %s2662_s0, 256  ;;  %p2664_p11 = scmp.lt.s32.totalorder %s3034_s16, %s2662_s0 }
  0x36   : > { %p2659_p4 = pnand %p2657_p2, %p2643_p3  ;;  %p2665_p5 = scmp.lt.s32.totalorder %s2663_s23, %s2656_s20 }
  0x38   : > { %p2660_p12 = pneg %p2659_p4  ;;  %p2666_p8 = por %p2665_p5, %p2664_p11 }
  0x3a   : > { %p2667_p9 = pnand %p2666_p8, %p2660_p12 }
  0x3c   : > { %2670 = shalt.err (!%p2667_p9)
}
  0x3d   : > { %2536 = dma.hbm_to_vmem [thread:$0]  (!%p3030_p13), %s3026_s21, 128, %s3034_s16, %s518_s27  }
  0x3e   : > { %p3758_p0 = scmp.lt.s32.totalorder %s2857_s24, 3  ;;  %p3759_p1 = scmp.ge.s32.totalorder %s2857_s24, 1 }
  0x40   : > { %p535_p3 = pnand %p3759_p1, %p3758_p0 }
  0x41   : > { %s3068_s30 = sand.u32 (!%p535_p3), 1, %s2849_s22  }
  0x42   : > { %538 = sbr.rel (%p535_p3) target bundleno = 1033 (0x409), region = 68  ;;  %s3071_s28 = sshll.u32 (!%p535_p3), %s3068_s30, 3 }
  0x43   : > { %s541_s29 = scalar_lea.sflag (!%p535_p3), [#allocation3], %s3068_s30 }
  0x49   : > { %2828 = dma.done.wait (%p3004_p6), %s541_s29, 128  }
  0x4a   : > { %2830 = vsyncadd (%p3004_p6), %s541_s29, 4294967168  ;;  %p633_p11 = scmp.lt.s32.totalorder %s2982_s25, 1  ;;  %s3760_s26 = sld [smem:[#allocation20_spill]]  ;;  %v2860_v1 = vmov 0   ;;  %v659_v3 = vld [vmem:[%s3711_s8] sm:$0xf]  ;;  %v670_v5 = vlaneseq }
  0x4b   : > { %761 = vmatprep.mubr.bf16.mxu0 %v2860_v1  ;;  %2598 = vset.pattern.permute.xlu0 %v2860_v1  ;;  %s2861_s17 = smov 17   ;;  %s3734_s23 = smov 16   ;;  %v660_v4 = vld [vmem:[%s3712_s9] sm:$0xf]  ;;  %v2371_v14 = vld [vmem:[%s3710_s7 + $0x4] sm:$0x3] }
  0x4c   : > { %s634_s16 = scalar_select %p633_p11, %s2982_s25, 1  ;;  %2599 = vset.pattern.permute.xlu1 %v2860_v1  ;;  %1446 = vmatprep.mubr.bf16.mxu1 %v2860_v1  ;;  %v3135_v6 = vshrl.u32 %v670_v5, 7  ;;  %v3137_v7 = vand.u32 127, %v670_v5  ;;  %v675_v10 = vld [vmem:[%s3710_s7] sm:$0x3]  ;;  %vm722_vm3 = vcmask 1041408  }
  0x4d   : > { %s3729_s29 = smov 15   ;;  %s3728_s27 = smov 127   ;;  %v2365_v11 = vld [vmem:[%s3710_s7 + $0x2] sm:$0x3]  ;;  %vm718_vm4 = vcmask 31744  }
  0x4e   : > { %s3081_s21 = sshll.u32 %s634_s16, 3  ;;  %s3733_s16 = smov 1   ;;  %v3140_v8 = vsub.s32 0, %v3135_v6  ;;  %v3143_v9 = vsub.s32 1, %v3135_v6  ;;  %vm672_vm0 = vcmp.lt.s32.totalorder %v3137_v7, 17  ;;  %vm696_vm1 = vcmp.lt.s32.totalorder %v3137_v7, 16 }
  0x4f   : > { %s3730_s20 = smov 113   ;;  %vm824_vm2 = vcmp.lt.s32.totalorder %v3137_v7, 15  ;;  %s3761_s5 = sld [smem:[#allocation25_spill]]  ;;  %v2375_v44 = vld [vmem:[%s3710_s7 + $0x6] sm:$0x3]  ;;  %vm902_vm5 = vcmp.lt.s32.totalorder %v3137_v7, 1 }
  0x50   : > { %s637_s0 = scalar_lea.vmem %s3760_s26, %s3081_s21  ;;  %s3731_s26 = smov 112   ;;  %v3157_v15 = vrot.slane %v675_v10, %v3140_v8  ;;  %v3160_v16 = vrot.slane %v675_v10, %v3143_v9  ;;  %v3163_v17 = vrot.slane %v2365_v11, %v3140_v8  ;;  %v3166_v18 = vrot.slane %v2365_v11, %v3143_v9  ;;  %v2382_v62 = vld [vmem:[%s3710_s7 + $0xa] sm:$0x3] }
  0x51   : > { %v3087_v0 = vld [vmem:[%s637_s0] sm:$0xff]  ;;  %s3732_s0 = smov 111   ;;  %v3170_v21 = vrot.slane %v2371_v14, %v3143_v9  ;;  %v3195_v41 = vrot.slane %v2371_v14, %v3140_v8  ;;  %v3208_v48 = vrot.slane %v2375_v44, %v3143_v9  ;;  %v3218_v54 = vrot.slane %v2375_v44, %v3140_v8  ;;  %s3762_s1 = sld [smem:[#allocation21_spill]] }
  0x52   : > { %666 = vrot.lane.b32.xlu1 %v3087_v0, %s2861_s17  ;;  %692 = vrot.lane.b32.xlu0 %v3087_v0, %s3734_s23  ;;  %v3097_v2 = vcombine.high %v3087_v0, %v3087_v0  ;;  %vm1036_vm6 = vcmp.lt.s32.totalorder %v3137_v7, 127  ;;  %v978_v5 = vpack.c.bf16 %v3087_v0, %v3087_v0  ;;  %vm1114_vm7 = vcmp.lt.s32.totalorder %v3137_v7, 113  ;;  %s3763_s2 = sld [smem:[#allocation22_spill]]  ;;  %s3764_s12 = smov 16  }
  0x53   : > { %vm1192_vm8 = vcmp.lt.s32.totalorder %v3137_v7, 112  ;;  %vm1270_vm9 = vcmp.lt.s32.totalorder %v3137_v7, 111  ;;  %s3771_s6 = sld [smem:[#allocation26_spill]]  ;;  %p3773_p12 = scmp.ne.s32.totalorder %s3754_s18, 0 }
  0x54   : > { %v979_v61 = vpack.c.bf16 %v3097_v2, %v3097_v2 }
  0x55   : > { %v2366_v39 = vld [vmem:[%s3761_s5 + $0x2] sm:$0x3]  ;;  %v689_v52 = vld [vmem:[%s3761_s5] sm:$0x3]  ;;  %v2372_v59 = vld [vmem:[%s3761_s5 + $0x4] sm:$0x3] }
  0x56   : > { %668 = vrot.lane.b32.xlu1 %v3097_v2, %s2861_s17  ;;  %694 = vrot.lane.b32.xlu0 %v3097_v2, %s3734_s23  ;;  %v2376_v11 = vld [vmem:[%s3761_s5 + $0x6] sm:$0x3] }
  0x58   : > { %s647_s23 = scalar_lea.vmem %s3763_s2, %s3081_s21 }
  0x5a   : > { %822 = vrot.lane.b32.xlu1 %v3097_v2, %s3729_s29  ;;  %820 = vrot.lane.b32.xlu0 %v3087_v0, %s3729_s29  ;;  %s3765_s29 = smov 1  }
  0x5e   : > { %900 = vrot.lane.b32.xlu1 %v3097_v2, %s3733_s16  ;;  %898 = vrot.lane.b32.xlu0 %v3087_v0, %s3733_s16  ;;  %s3735_s16 = scalar_lea.vmem [#allocation6], %s3071_s28 }
  0x62   : > { %1034 = vrot.lane.b32.xlu1 %v3097_v2, %s3728_s27  ;;  %1032 = vrot.lane.b32.xlu0 %v3087_v0, %s3728_s27 }
  0x66   : > { %1112 = vrot.lane.b32.xlu1 %v3097_v2, %s3730_s20  ;;  %1110 = vrot.lane.b32.xlu0 %v3087_v0, %s3730_s20  ;;  %s3766_s20 = smov 15  }
  0x6a   : > { %1190 = vrot.lane.b32.xlu1 %v3097_v2, %s3731_s26  ;;  %1188 = vrot.lane.b32.xlu0 %v3087_v0, %s3731_s26  ;;  %s642_s26 = scalar_lea.vmem %s3762_s1, %s3081_s21 }
  0x6e   : > { %1268 = vrot.lane.b32.xlu1 %v3097_v2, %s3732_s0  ;;  %1266 = vrot.lane.b32.xlu0 %v3087_v0, %s3732_s0  ;;  %s3768_s0 = smov 127  }
  0x72   : > { %1346 = vperm.xlu0 %2598, %v659_v3   ;;  %1366 = vperm.xlu1 %2599, %v660_v4   ;;  %v3240_v4 = vrot.slane %v2382_v62, %v3143_v9 }
  0xc4   : > { %v667_v12 = vpop.permute.xlu1 %666  ;;  %v693_v13 = vpop.permute.xlu0 %692 }
  0xc8   : > { %v669_v19 = vpop.permute.xlu1 %668  ;;  %v695_v20 = vpop.permute.xlu0 %694 }
  0xc9   : > { %v673_v22 = vsel %vm672_vm0, %v667_v12, %v669_v19  ;;  %v674_v23 = vsel %vm672_vm0, %v669_v19, %v667_v12  ;;  %v697_v24 = vsel %vm696_vm1, %v693_v13, %v695_v20  ;;  %v698_v25 = vsel %vm696_vm1, %v695_v20, %v693_v13  ;;  %v2386_v20 = vld [vmem:[%s3710_s7 + $0xc] sm:$0x3] }
  0xca   : > { %v687_v26 = vmul.f32 %v3157_v15, %v674_v23  ;;  %v688_v27 = vmul.f32 %v3160_v16, %v673_v22  ;;  %v712_v28 = vmul.f32 %v3163_v17, %v698_v25  ;;  %v713_v29 = vmul.f32 %v3166_v18, %v697_v24 }
  0xcb   : > { %v984_v12 = vsel %vm722_vm3, %v978_v5, 0  ;;  %v3252_v13 = vrot.slane %v2382_v62, %v3140_v8  ;;  %v3265_v25 = vrot.slane %v2386_v20, %v3143_v9  ;;  %v2869_v5 = vmov 839922192  }
  0xcc   : > { %v690_v30 = vpack.c.bf16 %v687_v26, %v687_v26  ;;  %v691_v31 = vpack.c.bf16 %v688_v27, %v688_v27  ;;  %v717_v32 = vpack.c.bf16 %v713_v29, %v713_v29  ;;  %v716_v33 = vpack.c.bf16 %v712_v28, %v712_v28  ;;  %v823_v34 = vpop.permute.xlu1 %822  ;;  %v821_v35 = vpop.permute.xlu0 %820  ;;  %v2379_v29 = vld [vmem:[%s3761_s5 + $0x8] sm:$0x3] }
  0xcd   : > { %v825_v36 = vsel %vm824_vm2, %v821_v35, %v823_v34  ;;  %v826_v43 = vsel %vm824_vm2, %v823_v34, %v821_v35  ;;  %v2390_v34 = vld [vmem:[%s3710_s7 + $0xe] sm:$0x3] }
  0xce   : > { %2367 = vmatprep.subr.msk.bf16.mxu0 %vm722_vm3, %v717_v32  ;;  %v724_v37 = vsel %vm722_vm3, %v716_v33, 0  ;;  %v841_v38 = vmul.f32 %v3170_v21, %v825_v36  ;;  %v774_v40 = vsel %vm722_vm3, %v690_v30, 0  ;;  %v840_v47 = vmul.f32 %v3195_v41, %v826_v43  ;;  %v2383_v43 = vld [vmem:[%s3761_s5 + $0xa] sm:$0x3] }
  0xcf   : > { %730 = vmatpush1.bf16.msra.mxu0 %v724_v37 }
  0xd0   : > { %2369 = vmatprep.subr.msk.bf16.mxu0 %vm722_vm3, %v691_v31  ;;  %v845_v42 = vpack.c.bf16 %v841_v38, %v841_v38  ;;  %v901_v45 = vpop.permute.xlu1 %900  ;;  %v899_v46 = vpop.permute.xlu0 %898  ;;  %v844_v50 = vpack.c.bf16 %v840_v47, %v840_v47  ;;  %v3275_v31 = vrot.slane %v2386_v20, %v3140_v8  ;;  %v3288_v38 = vrot.slane %v2390_v34, %v3143_v9  ;;  %v655_v20 = vld [vmem:[%s642_s26] sm:$0xff]  ;;  %s3767_s26 = smov 113  }
  0xd1   : > { %v903_v49 = vsel %vm902_vm5, %v899_v46, %v901_v45  ;;  %v904_v56 = vsel %vm902_vm5, %v901_v45, %v899_v46  ;;  %v3298_v45 = vrot.slane %v2390_v34, %v3140_v8 }
  0xd2   : > { %2368 = vmatmul.mubr.msk.bf16.vlgmr.msra.gmra.mrb[0].mxu0 %vm718_vm4, %v2366_v39  ;;  %v919_v51 = vmul.f32 %v3208_v48, %v903_v49  ;;  %v850_v53 = vsel %vm722_vm3, %v844_v50, 0  ;;  %v918_v57 = vmul.f32 %v3218_v54, %v904_v56  ;;  %v2394_v49 = vld [vmem:[%s3710_s7 + $0x10] sm:$0x3] }
  0xd3   : > { %780 = vmatpush1.bf16.msra.mxu0 %v774_v40  ;;  %811 = vmatprep.mubr.bf16.mxu0 %v2860_v1 }
  0xd4   : > { %2373 = vmatprep.subr.msk.bf16.mxu0 %vm722_vm3, %v845_v42  ;;  %v923_v55 = vpack.c.bf16 %v919_v51, %v919_v51  ;;  %v922_v58 = vpack.c.bf16 %v918_v57, %v918_v57  ;;  %v1035_v63 = vpop.permute.xlu1 %1034  ;;  %v1033_v3 = vpop.permute.xlu0 %1032 }
  0xd5   : > { %v1038_v2 = vsel %vm1036_vm6, %v1035_v63, %v1033_v3  ;;  %v1037_v19 = vsel %vm1036_vm6, %v1033_v3, %v1035_v63 }
  0xd6   : > { %v928_v60 = vsel %vm722_vm3, %v922_v58, 0  ;;  %v1053_v10 = vmul.f32 %v3240_v4, %v1038_v2  ;;  %v1052_v24 = vmul.f32 %v3252_v13, %v1037_v19  ;;  %v2387_v58 = vld [vmem:[%s3761_s5 + $0xc] sm:$0x3]  ;;  %v2395_v2 = vld [vmem:[%s3761_s5 + $0x10] sm:$0x3] }
  0xd8   : > { %v1057_v14 = vpack.c.bf16 %v1053_v10, %v1053_v10  ;;  %v1113_v22 = vpop.permute.xlu1 %1112  ;;  %v1111_v23 = vpop.permute.xlu0 %1110  ;;  %v1056_v27 = vpack.c.bf16 %v1052_v24, %v1052_v24  ;;  %v1349_v10 = vunpack.c.l.s4 %v2869_v5 }
  0xd9   : > { %v1116_v26 = vsel %vm1114_vm7, %v1113_v22, %v1111_v23  ;;  %v1115_v33 = vsel %vm1114_vm7, %v1111_v23, %v1113_v22  ;;  %v656_v22 = vld [vmem:[%s647_s23] sm:$0xff]  ;;  %s3736_s23 = sshll.u32 %s3068_s30, 2 }
  0xda   : > { %v1131_v28 = vmul.f32 %v3265_v25, %v1116_v26  ;;  %v1062_v30 = vsel %vm722_vm3, %v1056_v27, 0  ;;  %v1130_v37 = vmul.f32 %v3275_v31, %v1115_v33  ;;  %v1357_v24 = vsub.f32 1.0, %v656_v22  ;;  %s3371_s27 = scalar_lea.vmem [#allocation8], %s3736_s23  ;;  %s3772_s23 = scalar_lea.vmem [#allocation6], %s3071_s28 }
  0xdc   : > { %v1135_v32 = vpack.c.bf16 %v1131_v28, %v1131_v28  ;;  %v1191_v35 = vpop.permute.xlu1 %1190  ;;  %v1189_v36 = vpop.permute.xlu0 %1188  ;;  %v1134_v40 = vpack.c.bf16 %v1130_v37, %v1130_v37 }
  0xdd   : > { %v1194_v39 = vsel %vm1192_vm8, %v1191_v35, %v1189_v36  ;;  %v1193_v47 = vsel %vm1192_vm8, %v1189_v36, %v1191_v35  ;;  %v2870_v35 = vmov 0.0  }
  0xde   : > { %2370 = vmatmul.mubr.msk.bf16.vlgmr.msra.gmra.mrb[0].mxu0 %vm718_vm4, %v689_v52  ;;  %v1209_v42 = vmul.f32 %v3288_v38, %v1194_v39  ;;  %v1140_v44 = vsel %vm722_vm3, %v1134_v40, 0  ;;  %v1208_v52 = vmul.f32 %v3298_v45, %v1193_v47 }
  0xdf   : > { %856 = vmatpush1.bf16.msra.mxu0 %v850_v53  ;;  %887 = vmatprep.mubr.bf16.mxu0 %v2860_v1  ;;  %v3311_v53 = vrot.slane %v2394_v49, %v3143_v9 }
  0xe0   : > { %2377 = vmatprep.subr.msk.bf16.mxu0 %vm722_vm3, %v923_v55  ;;  %v1213_v46 = vpack.c.bf16 %v1209_v42, %v1209_v42  ;;  %v1269_v50 = vpop.permute.xlu1 %1268  ;;  %v1267_v51 = vpop.permute.xlu0 %1266  ;;  %v1212_v56 = vpack.c.bf16 %v1208_v52, %v1208_v52  ;;  %v662_v42 = vld [vmem:[%s3714_s11] sm:$0xf] }
  0xe1   : > { %v1272_v55 = vsel %vm1270_vm9, %v1269_v50, %v1267_v51  ;;  %v1271_v9 = vsel %vm1270_vm9, %v1267_v51, %v1269_v50 }
  0xe2   : > { %v1287_v57 = vmul.f32 %v3311_v53, %v1272_v55 }
  0xea   : > { %2374 = vmatmul.mubr.msk.bf16.vlgmr.msra.gmra.mrb[0].mxu0 %vm718_vm4, %v2372_v59  ;;  %v1218_v59 = vsel %vm722_vm3, %v1212_v56, 0 }
  0xeb   : > { %934 = vmatpush1.bf16.msra.mxu0 %v928_v60  ;;  %965 = vmatprep.mubr.bf16.mxu0 %v2860_v1  ;;  %v3321_v60 = vrot.slane %v2394_v49, %v3140_v8  ;;  %v2391_v8 = vld [vmem:[%s3761_s5 + $0xe] sm:$0x3] }
  0xec   : > { %2380 = vmatprep.subr.msk.bf16.mxu0 %vm722_vm3, %v979_v61  ;;  %v1291_v61 = vpack.c.bf16 %v1287_v57, %v1287_v57 }
  0xed   : > { %v1286_v62 = vmul.f32 %v3321_v60, %v1271_v9 }
  0xef   : > { %v1290_v63 = vpack.c.bf16 %v1286_v62, %v1286_v62 }
  0xf1   : > { %v1296_v3 = vsel %vm722_vm3, %v1290_v63, 0 }
  0xf6   : > { %2378 = vmatmul.mubr.msk.bf16.vlgmr.msra.gmra.mrb[0].mxu0 %vm718_vm4, %v2376_v11  ;;  %v1350_v11 = vunpack.c.0.s8 %v1349_v10 }
  0xf7   : > { %990 = vmatpush1.bf16.msra.mxu0 %v984_v12  ;;  %1021 = vmatprep.mubr.bf16.mxu0 %v2860_v1 }
  0xf8   : > { %2384 = vmatprep.subr.msk.bf16.mxu0 %vm722_vm3, %v1057_v14  ;;  %v3340_v12 = vsub.s32 %v1350_v11, %v3135_v6  ;;  %v1347_v14 = vpop.permute.xlu0 %1346  ;;  %v1367_v6 = vpop.permute.xlu1 %1366 }
  0xfa   : > { %v1354_v19 = vrot.slane %v1347_v14, %v3340_v12 }
  0xfc   : > { %v1356_v23 = vmul.f32 %v1354_v19, %v655_v20 }
  0xfe   : > { %v1358_v27 = vmul.f32 %v1357_v24, %v1356_v23 }
 0x102   : > { %2381 = vmatmul.mubr.msk.bf16.vlgmr.msra.gmra.mrb[0].mxu0 %vm718_vm4, %v2379_v29 }
 0x103   : > { %1068 = vmatpush1.bf16.msra.mxu0 %v1062_v30  ;;  %1099 = vmatprep.mubr.bf16.mxu0 %v2860_v1 }
 0x104   : > { %2388 = vmatprep.subr.msk.bf16.mxu0 %vm722_vm3, %v1135_v32  ;;  %v1374_v32 = vrot.slane %v1367_v6, %v3340_v12 }
 0x10e   : > { %2385 = vmatmul.mubr.msk.bf16.vlgmr.msra.gmra.mrb[0].mxu0 %vm718_vm4, %v2383_v43  ;;  %v661_v43 = vld [vmem:[%s3713_s10] sm:$0xf] }
 0x10f   : > { %1146 = vmatpush1.bf16.msra.mxu0 %v1140_v44  ;;  %1177 = vmatprep.mubr.bf16.mxu0 %v2860_v1 }
 0x110   : > { %2392 = vmatprep.subr.msk.bf16.mxu0 %vm722_vm3, %v1213_v46 }
 0x11a   : > { %2389 = vmatmul.mubr.msk.bf16.vlgmr.msra.gmra.mrb[0].mxu0 %vm718_vm4, %v2387_v58 }
 0x11b   : > { %1224 = vmatpush1.bf16.msra.mxu0 %v1218_v59  ;;  %1255 = vmatprep.mubr.bf16.mxu0 %v2860_v1 }
 0x11c   : > { %2396 = vmatprep.subr.msk.bf16.mxu0 %vm722_vm3, %v1291_v61 }
 0x126   : > { %2393 = vmatmul.mubr.msk.bf16.vlgmr.msra.gmra.mrb[0].mxu0 %vm718_vm4, %v2391_v8 }
 0x127   : > { %1302 = vmatpush1.bf16.msra.mxu0 %v1296_v3  ;;  %1333 = vmatprep.mubr.bf16.mxu0 %v2860_v1 }
 0x132   : > { %2397 = vmatmul.mubr.msk.bf16.vlgmr.msra.gmra.mrb[0].mxu0 %vm718_vm4, %v2395_v2 }
 0x205   : > { %v1335_v26 = vpop.f32.mrb[0].mxu0 }
 0x206   : > { %v1337_v28 = vpop.f32.mrb[1].mxu0 }
 0x207   : > { %v1361_v29 = vcombine.low %v1335_v26, %v1337_v28  ;;  %v1339_v30 = vpop.f32.mrb[2].mxu0 }
 0x208   : > { %v1340_v33 = vpop.f32.mrb[3].mxu0 }
 0x209   : > { %v1363_v34 = vadd.f32 %v1361_v29, %v1358_v27  ;;  %v1390_v27 = vld [vmem:[%s3771_s6] sm:$0x3] }
 0x20b   : > { %vm1376_vm10 = vcmp.gt.f32.partialorder %v1363_v34, %v1374_v32  ;;  %1982 = vst [vmem:[%s3735_s16] sm:$0xff] %v1363_v34  ;;  %s3769_s16 = smov 111   ;;  %v2404_v32 = vld [vmem:[%s3771_s6 + $0x4] sm:$0x3] }
 0x20c   : > { %v3356_v36 = vsel %vm1376_vm10, 1.0, %v2870_v35 }
 0x20d   : > { %v3360_v37 = vcombine.high %v3356_v36, %v3356_v36 }
 0x20f   : > { %v2605_v39 = vpack.i.bf16 %v3360_v37, %v3356_v36  ;;  %v2426_v40 = vpack.c.bf16 %v3360_v37, %v3356_v36 }
 0x211   : > { %2606 = vrot.lane.b32.xlu0 %v2605_v39, %s2861_s17  ;;  %2601 = vrot.lane.b32.xlu1 %v2605_v39, %s3764_s12  ;;  %2427 = vst.sshfl [vmem:[%s3371_s27] sm:$0x33 pattern:$0x76325410] %v2426_v40  ;;  %s3770_s17 = smov 112   ;;  %s3502_s12 = sshll.u32 %s2982_s25, 7 }
 0x215   : > { %2616 = vrot.lane.b32.xlu0 %v2605_v39, %s3765_s29  ;;  %2611 = vrot.lane.b32.xlu1 %v2605_v39, %s3766_s20  ;;  %s2062_s29 = sshll.u32 %s3772_s23, 4  ;;  %s2063_s29 = int_to_ptr.vmem [resolvable:$true] %s2062_s29 }
 0x216   : > { %s2671_s4 = scalar_lea.vmem %s2063_s29, 128 }
 0x217   : > { %p2672_p6 = scmp.ne.s32.totalorder %s2063_s29, %s2671_s4 }
 0x219   : > { %2626 = vrot.lane.b32.xlu0 %v2605_v39, %s3767_s26  ;;  %2621 = vrot.lane.b32.xlu1 %v2605_v39, %s3768_s0  ;;  %p2673_p13 = pnand %p2672_p6, %p3773_p12  ;;  %s2871_s26 = smov [#allocation6]  }
 0x21a   : > { %s2675_s0 = sshll.u32 %s2871_s26, 4  ;;  %s2676_s0 = int_to_ptr.vmem [resolvable:$false] %s2675_s0 }
 0x21b   : > { %p2674_p7 = pneg %p2673_p13  ;;  %s2677_s5 = scalar_lea.vmem %s2676_s0, 256 }
 0x21c   : > { %p2678_p10 = scmp.lt.s32.totalorder %s2063_s29, %s2676_s0  ;;  %p2679_p2 = scmp.lt.s32.totalorder %s2677_s5, %s2671_s4 }
 0x21d   : > { %2636 = vrot.lane.b32.xlu0 %v2605_v39, %s3769_s16  ;;  %2631 = vrot.lane.b32.xlu1 %v2605_v39, %s3770_s17  ;;  %v1636_v39 = vpack.c.bf16 %v3360_v37, %v3360_v37  ;;  %s3737_s17 = sand.u32 1, %s2982_s25   ;;  %s3508_s16 = scalar_lea.hbm %s3716_s13, %s3502_s12 }
 0x21e   : > { %s3514_s20 = scalar_lea.sflag [#allocation7], %s3737_s17  ;;  %p2680_p4 = por %p2679_p2, %p2678_p10 }
 0x220   : > { %p2681_p5 = pnand %p2680_p4, %p2674_p7 }
 0x221   : > { %1967 = vperm.xlu0 %2598, %v662_v42   ;;  %1947 = vperm.xlu1 %2599, %v661_v43  }
 0x283   : > { %v2607_v44 = vpop.permute.xlu0 %2606  ;;  %v2602_v46 = vpop.permute.xlu1 %2601 }
 0x284   : > { %v2609_v47 = vunpack.i.h.bf16 %v2607_v44  ;;  %v2608_v49 = vunpack.i.l.bf16 %v2607_v44  ;;  %v2604_v50 = vunpack.i.h.bf16 %v2602_v46  ;;  %v2603_v51 = vunpack.i.l.bf16 %v2602_v46  ;;  %v2407_v46 = vld [vmem:[%s3771_s6 + $0x6] sm:$0x3] }
 0x285   : > { %v1635_v44 = vpack.c.bf16 %v3356_v36, %v3356_v36 }
 0x286   : > { %v1386_v52 = vsel %vm672_vm0, %v2608_v49, %v2609_v47  ;;  %v1387_v55 = vsel %vm672_vm0, %v2609_v47, %v2608_v49  ;;  %v1397_v56 = vsel %vm696_vm1, %v2603_v51, %v2604_v50  ;;  %v1398_v57 = vsel %vm696_vm1, %v2604_v50, %v2603_v51 }
 0x287   : > { %v1389_v58 = vmul.f32 %v1386_v52, %v3160_v16  ;;  %v2612_v59 = vpop.permute.xlu1 %2611  ;;  %v1400_v61 = vmul.f32 %v1397_v56, %v3166_v18  ;;  %v1399_v9 = vmul.f32 %v1398_v57, %v3163_v17  ;;  %v1388_v62 = vmul.f32 %v1387_v55, %v3157_v15  ;;  %v2399_v15 = vld [vmem:[%s3771_s6 + $0x2] sm:$0x3]  ;;  %v2617_v17 = vpop.permute.xlu0 %2616  ;;  %v2410_v57 = vld [vmem:[%s3771_s6 + $0x8] sm:$0x3] }
 0x288   : > { %v2614_v63 = vunpack.i.h.bf16 %v2612_v59  ;;  %v2613_v8 = vunpack.i.l.bf16 %v2612_v59  ;;  %v2618_v20 = vunpack.i.l.bf16 %v2617_v17  ;;  %v1641_v47 = vsel %vm722_vm3, %v1635_v44, 0 }
 0x289   : > { %v1404_v3 = vpack.c.bf16 %v1400_v61, %v1400_v61  ;;  %v1403_v2 = vpack.c.bf16 %v1399_v9, %v1399_v9  ;;  %v1392_v11 = vpack.c.bf16 %v1389_v58, %v1389_v58  ;;  %v1391_v14 = vpack.c.bf16 %v1388_v62, %v1388_v62 }
 0x28a   : > { %v1509_v5 = vsel %vm824_vm2, %v2613_v8, %v2614_v63  ;;  %v1510_v22 = vsel %vm824_vm2, %v2614_v63, %v2613_v8 }
 0x28b   : > { %v1512_v10 = vmul.f32 %v1509_v5, %v3170_v21  ;;  %2400 = vmatprep.subr.msk.bf16.mxu1 %vm722_vm3, %v1404_v3  ;;  %v1409_v16 = vsel %vm722_vm3, %v1403_v2, 0  ;;  %v1459_v18 = vsel %vm722_vm3, %v1391_v14, 0  ;;  %v2619_v21 = vunpack.i.h.bf16 %v2617_v17  ;;  %v2622_v33 = vpop.permute.xlu1 %2621  ;;  %v2627_v37 = vpop.permute.xlu0 %2626  ;;  %v2413_v2 = vld [vmem:[%s3771_s6 + $0xa] sm:$0x3] }
 0x28c   : > { %1415 = vmatpush1.bf16.msra.mxu1 %v1409_v16  ;;  %v1511_v23 = vmul.f32 %v1510_v22, %v3195_v41  ;;  %v2624_v40 = vunpack.i.h.bf16 %v2622_v33  ;;  %v2623_v42 = vunpack.i.l.bf16 %v2622_v33  ;;  %v2629_v50 = vunpack.i.h.bf16 %v2627_v37 }
 0x28d   : > { %2402 = vmatprep.subr.msk.bf16.mxu1 %vm722_vm3, %v1392_v11  ;;  %v1516_v19 = vpack.c.bf16 %v1512_v10, %v1512_v10  ;;  %v1573_v24 = vsel %vm902_vm5, %v2618_v20, %v2619_v21  ;;  %v1574_v30 = vsel %vm902_vm5, %v2619_v21, %v2618_v20  ;;  %v2628_v51 = vunpack.i.l.bf16 %v2627_v37 }
 0x28e   : > { %v1576_v6 = vmul.f32 %v1573_v24, %v3208_v48  ;;  %v1515_v26 = vpack.c.bf16 %v1511_v23, %v1511_v23  ;;  %v1575_v41 = vmul.f32 %v1574_v30, %v3218_v54  ;;  %v1694_v54 = vsel %vm1036_vm6, %v2624_v40, %v2623_v42  ;;  %v2419_v23 = vld [vmem:[%s3771_s6 + $0xe] sm:$0x3]  ;;  %v2422_v24 = vld [vmem:[%s3771_s6 + $0x10] sm:$0x3] }
 0x28f   : > { %2401 = vmatmul.mubr.msk.bf16.vlgmr.msra.gmra.mrb[0].mxu1 %vm718_vm4, %v2399_v15  ;;  %v1696_v43 = vmul.f32 %v1694_v54, %v3240_v4  ;;  %v1693_v52 = vsel %vm1036_vm6, %v2623_v42, %v2624_v40  ;;  %v1758_v36 = vsel %vm1114_vm7, %v2629_v50, %v2628_v51  ;;  %v2632_v58 = vpop.permute.xlu1 %2631  ;;  %v1757_v9 = vsel %vm1114_vm7, %v2628_v51, %v2629_v50  ;;  %v2637_v5 = vpop.permute.xlu0 %2636 }
 0x290   : > { %1465 = vmatpush1.bf16.msra.mxu1 %v1459_v18  ;;  %1496 = vmatprep.mubr.bf16.mxu1 %v2860_v1  ;;  %v1521_v28 = vsel %vm722_vm3, %v1515_v26, 0  ;;  %v1580_v29 = vpack.c.bf16 %v1576_v6, %v1576_v6  ;;  %v1579_v48 = vpack.c.bf16 %v1575_v41, %v1575_v41  ;;  %v1695_v4 = vmul.f32 %v1693_v52, %v3252_v13 }
 0x291   : > { %2405 = vmatprep.subr.msk.bf16.mxu1 %vm722_vm3, %v1516_v19  ;;  %v1700_v49 = vpack.c.bf16 %v1696_v43, %v1696_v43  ;;  %v1760_v55 = vmul.f32 %v1758_v36, %v3265_v25  ;;  %v2634_v13 = vunpack.i.h.bf16 %v2632_v58  ;;  %v2633_v62 = vunpack.i.l.bf16 %v2632_v58  ;;  %v2416_v19 = vld [vmem:[%s3771_s6 + $0xc] sm:$0x3] }
 0x292   : > { %v1585_v34 = vsel %vm722_vm3, %v1579_v48, 0  ;;  %v1699_v56 = vpack.c.bf16 %v1695_v4, %v1695_v4  ;;  %v1759_v25 = vmul.f32 %v1757_v9, %v3275_v31  ;;  %v2639_v11 = vunpack.i.h.bf16 %v2637_v5 }
 0x293   : > { %v1764_v61 = vpack.c.bf16 %v1760_v55, %v1760_v55  ;;  %v1822_v63 = vsel %vm1192_vm8, %v2634_v13, %v2633_v62  ;;  %v2638_v14 = vunpack.i.l.bf16 %v2637_v5  ;;  %v1821_v31 = vsel %vm1192_vm8, %v2633_v62, %v2634_v13 }
 0x294   : > { %v1705_v59 = vsel %vm722_vm3, %v1699_v56, 0  ;;  %v1824_v8 = vmul.f32 %v1822_v63, %v3288_v38  ;;  %v1763_v3 = vpack.c.bf16 %v1759_v25, %v1759_v25  ;;  %v1823_v38 = vmul.f32 %v1821_v31, %v3298_v45 }
 0x295   : > { %v1886_v15 = vsel %vm1270_vm9, %v2639_v11, %v2638_v14  ;;  %v1885_v45 = vsel %vm1270_vm9, %v2638_v14, %v2639_v11 }
 0x296   : > { %v1769_v10 = vsel %vm722_vm3, %v1763_v3, 0  ;;  %v1828_v16 = vpack.c.bf16 %v1824_v8, %v1824_v8  ;;  %v1888_v17 = vmul.f32 %v1886_v15, %v3311_v53  ;;  %v1827_v18 = vpack.c.bf16 %v1823_v38, %v1823_v38 }
 0x297   : > { %v1887_v53 = vmul.f32 %v1885_v45, %v3321_v60 }
 0x298   : > { %v1833_v21 = vsel %vm722_vm3, %v1827_v18, 0  ;;  %v1892_v20 = vpack.c.bf16 %v1888_v17, %v1888_v17 }
 0x299   : > { %v1891_v22 = vpack.c.bf16 %v1887_v53, %v1887_v53 }
 0x29b   : > { %2403 = vmatmul.mubr.msk.bf16.vlgmr.msra.gmra.mrb[0].mxu1 %vm718_vm4, %v1390_v27  ;;  %v1897_v7 = vsel %vm722_vm3, %v1891_v22, 0 }
 0x29c   : > { %1527 = vmatpush1.bf16.msra.mxu1 %v1521_v28  ;;  %1558 = vmatprep.mubr.bf16.mxu1 %v2860_v1 }
 0x29d   : > { %2408 = vmatprep.subr.msk.bf16.mxu1 %vm722_vm3, %v1580_v29 }
 0x2a7   : > { %2406 = vmatmul.mubr.msk.bf16.vlgmr.msra.gmra.mrb[0].mxu1 %vm718_vm4, %v2404_v32 }
 0x2a8   : > { %1591 = vmatpush1.bf16.msra.mxu1 %v1585_v34  ;;  %1622 = vmatprep.mubr.bf16.mxu1 %v2860_v1 }
 0x2a9   : > { %2411 = vmatprep.subr.msk.bf16.mxu1 %vm722_vm3, %v1636_v39 }
 0x2b3   : > { %2409 = vmatmul.mubr.msk.bf16.vlgmr.msra.gmra.mrb[0].mxu1 %vm718_vm4, %v2407_v46 }
 0x2b4   : > { %1647 = vmatpush1.bf16.msra.mxu1 %v1641_v47  ;;  %1678 = vmatprep.mubr.bf16.mxu1 %v2860_v1 }
 0x2b5   : > { %2414 = vmatprep.subr.msk.bf16.mxu1 %vm722_vm3, %v1700_v49 }
 0x2bf   : > { %2412 = vmatmul.mubr.msk.bf16.vlgmr.msra.gmra.mrb[0].mxu1 %vm718_vm4, %v2410_v57 }
 0x2c0   : > { %1711 = vmatpush1.bf16.msra.mxu1 %v1705_v59  ;;  %1742 = vmatprep.mubr.bf16.mxu1 %v2860_v1 }
 0x2c1   : > { %2417 = vmatprep.subr.msk.bf16.mxu1 %vm722_vm3, %v1764_v61 }
 0x2cb   : > { %2415 = vmatmul.mubr.msk.bf16.vlgmr.msra.gmra.mrb[0].mxu1 %vm718_vm4, %v2413_v2 }
 0x2cc   : > { %1775 = vmatpush1.bf16.msra.mxu1 %v1769_v10  ;;  %1806 = vmatprep.mubr.bf16.mxu1 %v2860_v1 }
 0x2cd   : > { %2420 = vmatprep.subr.msk.bf16.mxu1 %vm722_vm3, %v1828_v16 }
 0x2d7   : > { %2418 = vmatmul.mubr.msk.bf16.vlgmr.msra.gmra.mrb[0].mxu1 %vm718_vm4, %v2416_v19 }
 0x2d8   : > { %1839 = vmatpush1.bf16.msra.mxu1 %v1833_v21  ;;  %1870 = vmatprep.mubr.bf16.mxu1 %v2860_v1 }
 0x2d9   : > { %2423 = vmatprep.subr.msk.bf16.mxu1 %vm722_vm3, %v1892_v20 }
 0x2e3   : > { %2421 = vmatmul.mubr.msk.bf16.vlgmr.msra.gmra.mrb[0].mxu1 %vm718_vm4, %v2419_v23 }
 0x2e4   : > { %1903 = vmatpush1.bf16.msra.mxu1 %v1897_v7  ;;  %1934 = vmatprep.mubr.bf16.mxu1 %v2860_v1 }
 0x2ef   : > { %2424 = vmatmul.mubr.msk.bf16.vlgmr.msra.gmra.mrb[0].mxu1 %vm718_vm4, %v2422_v24 }
 0x2f0   : > { %2684 = shalt.err (!%p2681_p5)
}
 0x2f1   : > { %s2685_s1 = scalar_lea.hbm %s3508_s16, 128  ;;  %s2689_s26 = scalar_lea.hbm %s3716_s13, 256 }
 0x2f2   : > { %p2686_p8 = scmp.ne.s32.totalorder %s3508_s16, %s2685_s1  ;;  %p2690_p1 = scmp.lt.u32.totalorder %s3508_s16, %s3716_s13 }
 0x2f3   : > { %p2691_p3 = scmp.lt.u32.totalorder %s2689_s26, %s2685_s1  ;;  %p2693_p6 = scmp.lt.u32.totalorder %s2685_s1, %s3508_s16 }
 0x2f4   : > { %p2687_p9 = pnand %p2686_p8, %p3773_p12 }
 0x2f5   : > { %p2692_p11 = por %p2691_p3, %p2690_p1 }
 0x2f6   : > { %p2688_p0 = pneg %p2687_p9 }
 0x2f7   : > { %p2694_p13 = por %p2693_p6, %p2692_p11 }
 0x2f9   : > { %p2695_p7 = pnand %p2694_p13, %p2688_p0 }
 0x2fb   : > { %2698 = shalt.err (!%p2695_p7)
}
 0x2fc   : > { %2524 = dma.vmem_to_hbm [thread:$0]  (%p3773_p12), %s2063_s29, 128, %s3508_s16, %s3514_s20  }
 0x2fd   : > { %s3738_s4 = sshll.u32 %s2982_s25, 6  ;;  %s2076_s1 = sshll.u32 %s3371_s27, 4  ;;  %s2077_s1 = int_to_ptr.vmem [resolvable:$true] %s2076_s1 }
 0x2fe   : > { %s3540_s2 = scalar_lea.hbm %s3717_s14, %s3738_s4  ;;  %s2699_s23 = scalar_lea.vmem %s2077_s1, 64 }
 0x2ff   : > { %p2700_p10 = scmp.ne.s32.totalorder %s2077_s1, %s2699_s23  ;;  %s2872_s26 = smov [#allocation8]  }
 0x300   : > { %s2703_s0 = sshll.u32 %s2872_s26, 4  ;;  %s2704_s0 = int_to_ptr.vmem [resolvable:$false] %s2703_s0 }
 0x301   : > { %p2701_p2 = pnand %p2700_p10, %p3773_p12  ;;  %s2705_s6 = scalar_lea.vmem %s2704_s0, 128 }
 0x302   : > { %p2706_p5 = scmp.lt.s32.totalorder %s2077_s1, %s2704_s0  ;;  %p2707_p8 = scmp.lt.s32.totalorder %s2705_s6, %s2699_s23 }
 0x303   : > { %p2702_p4 = pneg %p2701_p2 }
 0x304   : > { %p2708_p9 = por %p2707_p8, %p2706_p5 }
 0x306   : > { %p2709_p0 = pnand %p2708_p9, %p2702_p4 }
 0x308   : > { %2712 = shalt.err (!%p2709_p0)
}
 0x309   : > { %s2713_s27 = scalar_lea.hbm %s3540_s2, 64  ;;  %s2717_s5 = scalar_lea.hbm %s3717_s14, 128 }
 0x30a   : > { %p2714_p1 = scmp.ne.s32.totalorder %s3540_s2, %s2713_s27  ;;  %p2718_p6 = scmp.lt.u32.totalorder %s3540_s2, %s3717_s14 }
 0x30b   : > { %p2719_p13 = scmp.lt.u32.totalorder %s2717_s5, %s2713_s27  ;;  %p2721_p10 = scmp.lt.u32.totalorder %s2713_s27, %s3540_s2 }
 0x30c   : > { %p2715_p3 = pnand %p2714_p1, %p3773_p12 }
 0x30d   : > { %p2720_p7 = por %p2719_p13, %p2718_p6 }
 0x30e   : > { %p2716_p11 = pneg %p2715_p3 }
 0x30f   : > { %p2722_p2 = por %p2721_p10, %p2720_p7 }
 0x311   : > { %p2723_p4 = pnand %p2722_p2, %p2716_p11 }
 0x313   : > { %2726 = shalt.err (!%p2723_p4)
}
 0x314   : > { %2525 = dma.vmem_to_hbm [thread:$0]  (%p3773_p12), %s2077_s1, 64, %s3540_s2, %s3514_s20   ;;  %v1948_v1 = vpop.permute.xlu1 %1947  ;;  %v1968_v30 = vpop.permute.xlu0 %1967 }
 0x315   : > { %s3774_s3 = sld [smem:[#allocation23_spill]]  ;;  %v1955_v60 = vrot.slane %v1948_v1, %v3340_v12  ;;  %s3775_s27 = scalar_lea.vmem [#allocation2], %s3071_s28  ;;  %v1975_v39 = vrot.slane %v1968_v30, %v3340_v12 }
 0x316   : > { %v658_v26 = vld [vmem:[%s3775_s27] sm:$0xff]  ;;  %s625_s20 = scalar_lea.vmem [#allocation9], %s3071_s28  ;;  %s3574_s16 = scalar_lea.hbm %s3718_s15, %s3502_s12 }
 0x317   : > { %v1958_v28 = vsub.f32 1.0, %v658_v26  ;;  %s2090_s2 = sshll.u32 %s625_s20, 4  ;;  %s604_s29 = scalar_lea.vmem [#allocation5], %s3071_s28  ;;  %s3576_s2 = int_to_ptr.vmem [resolvable:$true] %s2090_s2 }
 0x318   : > { %s3581_s5 = sshll.u32 %s604_s29, 4  ;;  %s3776_s17 = sshll.u32 %s3068_s30, 2  ;;  %s3623_s5 = int_to_ptr.vmem [resolvable:$true] %s3581_s5 }
 0x319   : > { %s3585_s26 = scalar_lea.vmem [#allocation11], %s3776_s17  ;;  %s3777_s23 = sand.u32 1, %s2982_s25  }
 0x31a   : > { %s2727_s27 = scalar_lea.vmem %s3576_s2, 128 }
 0x31b   : > { %s652_s0 = scalar_lea.vmem %s3774_s3, %s3081_s21  ;;  %p2728_p5 = scmp.ne.s32.totalorder %s3576_s2, %s2727_s27 }
 0x31c   : > { %v657_v6 = vld [vmem:[%s652_s0] sm:$0xff]  ;;  %s3591_s0 = scalar_lea.sflag [#allocation10], %s3777_s23  ;;  %s2873_s21 = smov [#allocation9]  }
 0x31d   : > { %v1957_v27 = vmul.f32 %v1955_v60, %v657_v6  ;;  %p2729_p8 = pnand %p2728_p5, %p3773_p12  ;;  %s2731_s1 = sshll.u32 %s2873_s21, 4  ;;  %s2732_s1 = int_to_ptr.vmem [resolvable:$false] %s2731_s1 }
 0x31e   : > { %s2733_s4 = scalar_lea.vmem %s2732_s1, 256  ;;  %p2734_p0 = scmp.lt.s32.totalorder %s3576_s2, %s2732_s1 }
 0x31f   : > { %v1959_v48 = vmul.f32 %v1958_v28, %v1957_v27  ;;  %p2730_p9 = pneg %p2729_p8  ;;  %p2735_p1 = scmp.lt.s32.totalorder %s2733_s4, %s2727_s27 }
 0x321   : > { %p2736_p3 = por %p2735_p1, %p2734_p0 }
 0x323   : > { %p2737_p11 = pnand %p2736_p3, %p2730_p9 }
 0x3c2   : > { %v1936_v29 = vpop.f32.mrb[0].mxu1 }
 0x3c3   : > { %v1938_v41 = vpop.f32.mrb[1].mxu1 }
 0x3c4   : > { %v1962_v32 = vcombine.low %v1936_v29, %v1938_v41  ;;  %v1940_v33 = vpop.f32.mrb[2].mxu1 }
 0x3c5   : > { %v1941_v34 = vpop.f32.mrb[3].mxu1 }
 0x3c6   : > { %v1964_v40 = vadd.f32 %v1962_v32, %v1959_v48 }
 0x3c8   : > { %vm1977_vm11 = vcmp.gt.f32.partialorder %v1964_v40, %v1975_v39  ;;  %1995 = vst [vmem:[%s625_s20] sm:$0xff] %v1964_v40 }
 0x3c9   : > { %v2425_v12 = vsel %vm1977_vm11, 1.0, %v2870_v35 }
 0x3ca   : > { %2740 = shalt.err (!%p2737_p11)
}
 0x3cb   : > { %s2741_s20 = scalar_lea.hbm %s3574_s16, 128  ;;  %s2745_s21 = scalar_lea.hbm %s3718_s15, 256 }
 0x3cc   : > { %p2742_p6 = scmp.ne.s32.totalorder %s3574_s16, %s2741_s20  ;;  %p2746_p10 = scmp.lt.u32.totalorder %s3574_s16, %s3718_s15 }
 0x3cd   : > { %p2747_p2 = scmp.lt.u32.totalorder %s2745_s21, %s2741_s20  ;;  %p2749_p5 = scmp.lt.u32.totalorder %s2741_s20, %s3574_s16 }
 0x3ce   : > { %p2743_p13 = pnand %p2742_p6, %p3773_p12 }
 0x3cf   : > { %p2748_p4 = por %p2747_p2, %p2746_p10 }
 0x3d0   : > { %p2744_p7 = pneg %p2743_p13 }
 0x3d1   : > { %p2750_p8 = por %p2749_p5, %p2748_p4 }
 0x3d3   : > { %p2751_p9 = pnand %p2750_p8, %p2744_p7 }
 0x3d5   : > { %2754 = shalt.err (!%p2751_p9)
}
 0x3d6   : > { %2526 = dma.vmem_to_hbm [thread:$0]  (%p3773_p12), %s3576_s2, 128, %s3574_s16, %s3591_s0   ;;  %v1980_v35 = vadd.f32 %v2425_v12, %v3087_v0  ;;  %v1997_v42 = vcombine.high %v2425_v12, %v2425_v12 }
 0x3d7   : > { %s3778_s27 = sld [smem:[#allocation27_spill]]  ;;  %s3779_s17 = sshll.u32 %s2982_s25, 6 }
 0x3d8   : > { %v2428_v54 = vpack.c.bf16 %v1997_v42, %v2425_v12  ;;  %1981 = vst [vmem:[%s604_s29] sm:$0xff] %v1980_v35  ;;  %s3780_s2 = sld [smem:[#allocation28_spill]]  ;;  %s3781_s1 = sshll.u32 %s3585_s26, 4  ;;  %s3636_s1 = int_to_ptr.vmem [resolvable:$true] %s3781_s1 }
 0x3d9   : > { %s2014_s4 = scalar_lea.sflag [#allocation4], %s3068_s30  ;;  %s2874_s6 = smov [#allocation5]  }
 0x3da   : > { %s2759_s3 = sshll.u32 %s2874_s6, 4  ;;  %s2760_s3 = int_to_ptr.vmem [resolvable:$false] %s2759_s3 }
 0x3db   : > { %s2761_s28 = scalar_lea.vmem %s2760_s3, 256  ;;  %p2762_p11 = scmp.lt.s32.totalorder %s3623_s5, %s2760_s3 }
 0x3dd   : > { %s3620_s20 = scalar_lea.hbm %s3778_s27, %s3502_s12  ;;  %s2755_s12 = scalar_lea.vmem %s3623_s5, 128 }
 0x3de   : > { %s3632_s16 = scalar_lea.hbm %s3780_s2, %s3779_s17  ;;  %p2756_p0 = scmp.ne.s32.totalorder %s3623_s5, %s2755_s12 }
 0x3df   : > { %p2763_p6 = scmp.lt.s32.totalorder %s2761_s28, %s2755_s12 }
 0x3e0   : > { %p2757_p1 = pnand %p2756_p0, %p3773_p12 }
 0x3e1   : > { %p2764_p13 = por %p2763_p6, %p2762_p11 }
 0x3e2   : > { %p2758_p3 = pneg %p2757_p1 }
 0x3e4   : > { %p2765_p7 = pnand %p2764_p13, %p2758_p3 }
 0x3e6   : > { %2768 = shalt.err (!%p2765_p7)
}
 0x3e7   : > { %s2769_s25 = scalar_lea.hbm %s3620_s20, 128  ;;  %s2773_s17 = scalar_lea.hbm %s3778_s27, 256 }
 0x3e8   : > { %p2770_p10 = scmp.ne.s32.totalorder %s3620_s20, %s2769_s25  ;;  %p2774_p5 = scmp.lt.u32.totalorder %s3620_s20, %s3778_s27 }
 0x3e9   : > { %p2775_p8 = scmp.lt.u32.totalorder %s2773_s17, %s2769_s25  ;;  %p2777_p0 = scmp.lt.u32.totalorder %s2769_s25, %s3620_s20 }
 0x3ea   : > { %p2771_p2 = pnand %p2770_p10, %p3773_p12 }
 0x3eb   : > { %p2776_p9 = por %p2775_p8, %p2774_p5 }
 0x3ec   : > { %p2772_p4 = pneg %p2771_p2 }
 0x3ed   : > { %p2778_p1 = por %p2777_p0, %p2776_p9 }
 0x3ef   : > { %p2779_p3 = pnand %p2778_p1, %p2772_p4 }
 0x3f1   : > { %2782 = shalt.err (!%p2779_p3)
}
 0x3f2   : > { %2523 = dma.vmem_to_hbm [thread:$0]  (%p3773_p12), %s3623_s5, 128, %s3620_s20, %s2014_s4   ;;  %2429 = vst.sshfl [vmem:[%s3585_s26] sm:$0x33 pattern:$0x76325410] %v2428_v54 }
 0x3f3   : > { %s2783_s21 = scalar_lea.vmem %s3636_s1, 64  ;;  %s2875_s12 = smov [#allocation11]  }
 0x3f4   : > { %p2784_p11 = scmp.ne.s32.totalorder %s3636_s1, %s2783_s21  ;;  %s2787_s6 = sshll.u32 %s2875_s12, 4  ;;  %s2788_s6 = int_to_ptr.vmem [resolvable:$false] %s2787_s6 }
 0x3f5   : > { %s2789_s28 = scalar_lea.vmem %s2788_s6, 128  ;;  %p2790_p7 = scmp.lt.s32.totalorder %s3636_s1, %s2788_s6 }
 0x3f6   : > { %p2785_p6 = pnand %p2784_p11, %p3773_p12  ;;  %p2791_p10 = scmp.lt.s32.totalorder %s2789_s28, %s2783_s21 }
 0x3f8   : > { %p2786_p13 = pneg %p2785_p6  ;;  %p2792_p2 = por %p2791_p10, %p2790_p7 }
 0x3fa   : > { %p2793_p4 = pnand %p2792_p2, %p2786_p13 }
 0x3fc   : > { %2796 = shalt.err (!%p2793_p4)
}
 0x3fd   : > { %s2797_s5 = scalar_lea.hbm %s3632_s16, 64  ;;  %s2801_s4 = scalar_lea.hbm %s3780_s2, 128 }
 0x3fe   : > { %p2798_p5 = scmp.ne.s32.totalorder %s3632_s16, %s2797_s5  ;;  %p2802_p0 = scmp.lt.u32.totalorder %s3632_s16, %s3780_s2 }
 0x3ff   : > { %p2803_p1 = scmp.lt.u32.totalorder %s2801_s4, %s2797_s5  ;;  %p2805_p11 = scmp.lt.u32.totalorder %s2797_s5, %s3632_s16 }
 0x400   : > { %p2799_p8 = pnand %p2798_p5, %p3773_p12 }
 0x401   : > { %p2804_p3 = por %p2803_p1, %p2802_p0 }
 0x402   : > { %p2800_p9 = pneg %p2799_p8 }
 0x403   : > { %p2806_p6 = por %p2805_p11, %p2804_p3 }
 0x405   : > { %p2807_p13 = pnand %p2806_p6, %p2800_p9 }
 0x407   : > { %2810 = shalt.err (!%p2807_p13)
}
 0x408   : > { %2527 = dma.vmem_to_hbm [thread:$0]  (%p3773_p12), %s3636_s1, 64, %s3632_s16, %s3591_s0  }
 0x409 PF: > { %s3782_s29 = sld [smem:[#allocation16_spill]]  ;;  %p3783_p7 = scmp.ne.s32.totalorder %s3755_s19, 0 }
 0x40a   : > { %p3784_p10 = scmp.ge.s32.totalorder %s2857_s24, 2 }
 0x40c   : > { %p2538_p2 = pnand %p3784_p10, %p3783_p7 }
 0x40f   : > { %s2116_s17 = sand.u32 1, %s3782_s29  }
 0x410   : > { %s2117_s23 = scalar_lea.sflag [#allocation4], %s2116_s17 }
 0x411   : > { %2832 = dma.done.wait (!%p2538_p2), %s2117_s23, 128  }
 0x412   : > { %2834 = vsyncadd (!%p2538_p2), %s2117_s23, 4294967168  ;;  %s3785_s3 = sadd.s32 4294967294, %s2857_s24  }
 0x413   : > { %s2125_s21 = sand.u32 1, %s3785_s3  }
 0x414   : > { %s2126_s12 = scalar_lea.sflag [#allocation7], %s2125_s21 }
 0x415   : > { %2836 = dma.done.wait (!%p2538_p2), %s2126_s12, 192  }
 0x416   : > { %2838 = vsyncadd (!%p2538_p2), %s2126_s12, 4294967104  ;;  %s2144_s18 = scalar_lea.sflag [#allocation10], %s2125_s21 }
 0x417   : > { %2840 = dma.done.wait (!%p2538_p2), %s2144_s18, 192  }
 0x418   : > { %2842 = vsyncadd (!%p2538_p2), %s2144_s18, 4294967104  ;;  %s3786_s24 = sld [smem:[#allocation18_spill]]  ;;  %s3787_s0 = sld [smem:[#allocation17_spill]] }
 0x419   : > { %s3788_s23 = sld [smem:[#allocation19_spill]]  ;;  %s3789_s21 = smov %s2849_s22 }
 0x41e   : > { %p36_p12 = scmp.ge.s32.totalorder %s3786_s24, 4   ;;  %s3790_s22 = smov %s3787_s0 }
 0x420   :  { %38 = sbr.rel (!%p36_p12) target bundleno = 19 (0x13), region = 212 }
 0x427   :  { %2158 = vsyncpa [#allocation3], 1 }
 0x428   :  { %2160 = vsyncpa [#allocation3 + $0x1], 1 }
 0x429   :  { %2161 = vsyncpa [#allocation4], 1 }
 0x42a   :  { %2163 = vsyncpa [#allocation4 + $0x1], 1 }
 0x42b   :  { %2164 = vsyncpa [#allocation7], 1 }
 0x42c   :  { %2166 = vsyncpa [#allocation7 + $0x1], 1 }
 0x42d   :  { %2167 = vsyncpa [#allocation10], 1 }
 0x42e   :  { %2169 = vsyncpa [#allocation10 + $0x1], 1 }

</bundles_post_ra>
